<compile_context>
chip_gen: v7x
topology: tpu7x:2x2x1
jax: 0.10.0
libtpu: 0.0.40
codegen_flags: <defaults>
</compile_context>

<pallas_src>
import math
from functools import partial

import jax
import jax.numpy as jnp
from jax.experimental import pallas as pl
from jax.experimental.pallas import tpu as pltpu

# MXU operand dtype (review: bf16 roughly halves MXU cycles + weight bytes).
# Set to jnp.float32 for strict fp32 parity with the torch reference.
MXU_DTYPE = jnp.bfloat16


# ----------------------------- Fused whole-encoder kernel -----------------------------

def _welkir_encoder_kernel(
    tabs_ref,                                       # SMEM (L*3*T,) flow-type tables (flattened)
    h0_ref, mask_ref, cfg_ref, dfg_ref, rdg_ref,    # activations / mask / flow matrices
    wqkv_ref, bqkv_ref, wo_ref, bo_ref, ln1g_ref, ln1b_ref,
    wi_ref, bi_ref, wo2_ref, bo2_ref, ln2g_ref, ln2b_ref,
    hs_ref,                                         # (1, Bb*S, H) per-layer hidden-state output
    h_res,                                          # VMEM (Bb*S, H) f32 resident hidden state
    *, batch_blk, seq, num_heads, head_dim, scale, eps, num_flow_types):
    l = pl.program_id(1)                            # layer index (grid axis 1, "arbitrary")
    Bb, S, D, T = batch_blk, seq, head_dim, num_flow_types
    H = num_heads * head_dim

    # Layer 0: pull the input hidden states into the resident scratch.
    @pl.when(l == 0)
    def _():
        h_res[...] = h0_ref[...].astype(jnp.float32)

    x = h_res[...]                                   # (Bb*S, H) f32, resident across layers

    # Fused Q/K/V projection for all rows: (Bb*S, H) @ (H, 3H) + (1, 3H)
    qkv = jnp.dot(x.astype(MXU_DTYPE), wqkv_ref[0],
                  preferred_element_type=jnp.float32) + bqkv_ref[0]
    qkv_m = qkv.astype(MXU_DTYPE)                    # MXU-operand view for score / PV matmuls

    tab0 = l * 3 * T                                 # this layer's slab in the flat SMEM table
    ctx_rows = []
    for b in range(Bb):
        # Flow-type bias (shared across heads): embedding lookup via compare/select against
        # the tiny SMEM tables; t==0 is the zero padding row (padding_idx=0) -> skipped.
        bias = jnp.zeros((S, S), jnp.float32)
        for r, idx_ref in enumerate((cfg_ref, dfg_ref, rdg_ref)):
            idx = idx_ref[b]                         # (S, S) int32
            for t in range(1, T):
                bias = bias + jnp.where(idx == t, tabs_ref[tab0 + r * T + t], 0.0)
        bm = bias + mask_ref[b]                      # bias + additive mask, hoisted out of head loop

        r0 = b * S
        heads = []
        for hd in range(num_heads):
            q_h = qkv_m[r0:r0 + S, hd * D:(hd + 1) * D]
            k_h = qkv_m[r0:r0 + S, H + hd * D:H + (hd + 1) * D]
            v_h = qkv_m[r0:r0 + S, 2 * H + hd * D:2 * H + (hd + 1) * D]
            scores = jax.lax.dot_general(            # contract head_dim, no K transpose
                q_h, k_h, (((1,), (1,)), ((), ())),
                preferred_element_type=jnp.float32) * scale + bm
            m = jnp.max(scores, axis=-1, keepdims=True)
            e = jnp.exp(scores - m)
            probs = e / jnp.sum(e, axis=-1, keepdims=True)          # exact softmax
            heads.append(jnp.dot(probs.astype(MXU_DTYPE), v_h,
                                 preferred_element_type=jnp.float32))
        ctx_rows.append(jnp.concatenate(heads, axis=-1))            # (S, H) head merge, no HBM trip
    ctx = ctx_rows[0] if Bb == 1 else jnp.concatenate(ctx_rows, axis=0)   # (Bb*S, H)

    # Attention output dense: ONE (Bb*S, H) @ (H, H) matmul.
    attn = jnp.dot(ctx.astype(MXU_DTYPE), wo_ref[0],
                   preferred_element_type=jnp.float32) + bo_ref[0]

    def layer_norm(y, g, b_):
        mean = jnp.mean(y, axis=-1, keepdims=True)
        var = jnp.mean((y - mean) ** 2, axis=-1, keepdims=True)     # biased var (torch LN)
        return (y - mean) * jax.lax.rsqrt(var + eps) * g + b_

    y1 = layer_norm(attn + x, ln1g_ref[0], ln1b_ref[0])

    # FFN: intermediate dense + exact (erf) GELU, then output dense + add&LN.
    inter = jnp.dot(y1.astype(MXU_DTYPE), wi_ref[0],
                    preferred_element_type=jnp.float32) + bi_ref[0]
    inter = 0.5 * inter * (1.0 + jax.lax.erf(inter * 0.7071067811865476))
    ffn = jnp.dot(inter.astype(MXU_DTYPE), wo2_ref[0],
                  preferred_element_type=jnp.float32) + bo2_ref[0]
    y2 = layer_norm(ffn + y1, ln2g_ref[0], ln2b_ref[0])

    h_res[...] = y2                                  # stays resident for the next layer
    hs_ref[0] = y2.astype(hs_ref.dtype)              # per-layer hidden state for output_hidden_states


# ----------------------------- Pallas wrapper -----------------------------

def _default_batch_blocks(B):
    # v7x has 2 TensorCores/chip: give each core one half of the batch (width-2 parallel
    # axis).  On single-TC chips (v5e/v6e) a batch grid is a serial loop -> collapse fully.
    try:
        kind = jax.devices()[0].device_kind.lower()
    except Exception:
        return 1
    return 2 if ("v7" in kind and B % 2 == 0) else 1


def pallas_welkir_encoder(h, stacked, attn_mask_add, cfg_matrix, dfg_matrix, rdg_matrix,
                          *, num_heads, eps, batch_blocks=None):
    """h: (B, S, H); attn_mask_add: (B, 1, S); cfg/dfg/rdg: (B, S, S) int32.

    Returns all per-layer hidden states as (L, B, S, H)."""
    B, S, H = h.shape
    L = stacked["wqkv"].shape[0]
    I = stacked["wi"].shape[2]
    D = H // num_heads
    T = stacked["flow_tabs_flat"].shape[0] // (3 * L)

    if batch_blocks is None:
        batch_blocks = _default_batch_blocks(B)
    assert B % batch_blocks == 0
    Bb = B // batch_blocks

    kernel = partial(_welkir_encoder_kernel,
                     batch_blk=Bb, seq=S, num_heads=num_heads, head_dim=D,
                     scale=1.0 / math.sqrt(D), eps=eps, num_flow_types=T)

    def per_batch(shape):        # blocked along the batch axis only (constant along layers)
        n = len(shape)
        return pl.BlockSpec(shape, lambda b, l, _n=n: (b,) + (0,) * (_n - 1))

    def per_layer(shape):        # stacked (L, ...) params, blocked along the layer axis
        n = len(shape)
        return pl.BlockSpec((1,) + shape, lambda b, l, _n=n: (l,) + (0,) * _n)

    hs = pl.pallas_call(
        kernel,
        out_shape=jax.ShapeDtypeStruct((L, B * S, H), h.dtype),
        grid=(batch_blocks, L),                       # layer axis innermost (sequential carry)
        in_specs=[
            pl.BlockSpec(memory_space=pltpu.MemorySpace.SMEM),   # flow tables (L*3*T,), 1-D SMEM
            per_batch((Bb * S, H)),                              # layer-0 hidden states
            per_batch((Bb, 1, S)),                               # additive attention mask
            per_batch((Bb, S, S)),                               # cfg flow matrix
            per_batch((Bb, S, S)),                               # dfg flow matrix
            per_batch((Bb, S, S)),                               # rdg flow matrix
            per_layer((H, 3 * H)), per_layer((1, 3 * H)),        # fused QKV (bf16 weights)
            per_layer((H, H)), per_layer((1, H)),                # attention output dense
            per_layer((1, H)), per_layer((1, H)),                # LN1 gamma/beta
            per_layer((H, I)), per_layer((1, I)),                # intermediate dense
            per_layer((I, H)), per_layer((1, H)),                # FFN output dense
            per_layer((1, H)), per_layer((1, H)),                # LN2 gamma/beta
        ],
        out_specs=pl.BlockSpec((1, Bb * S, H), lambda b, l: (l, b, 0)),
        scratch_shapes=[pltpu.VMEM((Bb * S, H), jnp.float32)],   # resident hidden state
        compiler_params=pltpu.CompilerParams(
            dimension_semantics=("parallel", "arbitrary"),
            vmem_limit_bytes=32 * 1024 * 1024),
    )(stacked["flow_tabs_flat"], h.reshape(B * S, H), attn_mask_add,
      cfg_matrix, dfg_matrix, rdg_matrix,
      stacked["wqkv"], stacked["bqkv"], stacked["wo"], stacked["bo"],
      stacked["ln1_g"], stacked["ln1_b"],
      stacked["wi"], stacked["bi"], stacked["wo2"], stacked["bo2"],
      stacked["ln2_g"], stacked["ln2_b"])

    return hs.reshape(L, B, S, H)


# ----------------------------- Model (glue) -----------------------------

def make_config():
    return dict(
        hidden_size=32,
        num_attention_heads=4,
        intermediate_size=64,
        num_hidden_layers=2,
        layer_norm_eps=1e-12,
        num_cfg_flow_types=5,
        num_dfg_flow_types=5,
        num_rdg_flow_types=5,
        add_flow_self_attn_bias=True,
    )


def init_params(cfg, key):
    H = cfg["hidden_size"]
    I = cfg["intermediate_size"]
    L = cfg["num_hidden_layers"]
    T = max(cfg["num_cfg_flow_types"], cfg["num_dfg_flow_types"], cfg["num_rdg_flow_types"]) + 1

    def dense(k, din, dout):
        k1, k2 = jax.random.split(k)
        return (0.02 * jax.random.normal(k1, (din, dout), jnp.float32),
                0.02 * jax.random.normal(k2, (dout,), jnp.float32))

    def emb_table(k, n):
        # (n+1,) per-type scalar bias; padding_idx=0 row is zero; zero-pad to common T.
        t = 0.02 * jax.random.normal(k, (n + 1,), jnp.float32)
        t = t.at[0].set(0.0)
        return jnp.pad(t, (0, T - (n + 1)))

    names = ("wqkv", "bqkv", "wo", "bo", "ln1_g", "ln1_b",
             "wi", "bi", "wo2", "bo2", "ln2_g", "ln2_b", "flow")
    per_layer = {n: [] for n in names}
    keys = jax.random.split(key, L * 9)
    ki = 0
    for _ in range(L):
        wq, bq = dense(keys[ki], H, H); ki += 1
        wk, bk = dense(keys[ki], H, H); ki += 1
        wv, bv = dense(keys[ki], H, H); ki += 1
        per_layer["wqkv"].append(jnp.concatenate([wq, wk, wv], axis=1))        # (H, 3H)
        per_layer["bqkv"].append(jnp.concatenate([bq, bk, bv]).reshape(1, 3 * H))
        wo, bo = dense(keys[ki], H, H); ki += 1
        per_layer["wo"].append(wo); per_layer["bo"].append(bo.reshape(1, H))
        per_layer["ln1_g"].append(jnp.ones((1, H), jnp.float32))
        per_layer["ln1_b"].append(jnp.zeros((1, H), jnp.float32))
        wi, bi = dense(keys[ki], H, I); ki += 1
        per_layer["wi"].append(wi); per_layer["bi"].append(bi.reshape(1, I))
        wo2, bo2 = dense(keys[ki], I, H); ki += 1
        per_layer["wo2"].append(wo2); per_layer["bo2"].append(bo2.reshape(1, H))
        per_layer["ln2_g"].append(jnp.ones((1, H), jnp.float32))
        per_layer["ln2_b"].append(jnp.zeros((1, H), jnp.float32))
        k1 = keys[ki]; ki += 1
        k2 = keys[ki]; ki += 1
        k3 = keys[ki]; ki += 1
        per_layer["flow"].append(jnp.stack([
            emb_table(k1, cfg["num_cfg_flow_types"]),
            emb_table(k2, cfg["num_dfg_flow_types"]),
            emb_table(k3, cfg["num_rdg_flow_types"])], axis=0))                # (3, T)

    stacked = {}
    for n in ("wqkv", "wo", "wi", "wo2"):              # MXU weights stored bf16 in HBM
        stacked[n] = jnp.stack(per_layer[n]).astype(MXU_DTYPE)
    for n in ("bqkv", "bo", "ln1_g", "ln1_b", "bi", "bo2", "ln2_g", "ln2_b"):
        stacked[n] = jnp.stack(per_layer[n])           # biases / LN params stay f32
    stacked["flow_tabs_flat"] = jnp.stack(per_layer["flow"]).reshape(-1)       # (L*3*T,)
    return {"stacked": stacked}


def welkir_encoder_forward(params, cfg, hidden_states, attn_mask_add,
                           cfg_matrix, dfg_matrix, rdg_matrix):
    """Returns (last_hidden_state, all_hidden_states) — output_hidden_states=True."""
    # TODO(synk): output_attentions / cross-attention / past_key_values decoder-cache and
    # relative_key(_query) position-embedding paths not implemented (config uses
    # is_decoder=False, add_cross_attention=False, position_embedding_type='absolute').
    hs = pallas_welkir_encoder(
        hidden_states, params["stacked"], attn_mask_add,
        cfg_matrix, dfg_matrix, rdg_matrix,
        num_heads=cfg["num_attention_heads"], eps=float(cfg["layer_norm_eps"]))
    L = hs.shape[0]
    all_hidden_states = (hidden_states,) + tuple(hs[l] for l in range(L))
    return hs[-1], all_hidden_states


# ----------------------------- Main -----------------------------

if __name__ == "__main__":
    cfg = make_config()
    B, S, H = 2, 8, cfg["hidden_size"]

    key = jax.random.PRNGKey(0)
    kp, kx, kc, kd, kr = jax.random.split(key, 5)

    params = init_params(cfg, kp)
    hidden_states = jax.random.normal(kx, (B, S, H), jnp.float32)

    # flow-type matrices: integer ids in [0, num_types] (0 = padding / no flow)
    cfg_matrix = jax.random.randint(kc, (B, S, S), 0, cfg["num_cfg_flow_types"] + 1, jnp.int32)
    dfg_matrix = jax.random.randint(kd, (B, S, S), 0, cfg["num_dfg_flow_types"] + 1, jnp.int32)
    rdg_matrix = jax.random.randint(kr, (B, S, S), 0, cfg["num_rdg_flow_types"] + 1, jnp.int32)

    # attention mask: batch 1 has last 2 positions padded; additive extended mask (B, 1, S)
    pad_mask = jnp.ones((B, S), jnp.float32).at[1, -2:].set(0.0)
    attn_mask_add = ((1.0 - pad_mask) * -1e9).reshape(B, 1, S)

    fwd = jax.jit(partial(welkir_encoder_forward, params, cfg))
    last_hidden, all_hidden = fwd(hidden_states, attn_mask_add,
                                  cfg_matrix, dfg_matrix, rdg_matrix)
    jax.block_until_ready(last_hidden)

    assert last_hidden.shape == (B, S, H)
    assert len(all_hidden) == cfg["num_hidden_layers"] + 1
    assert bool(jnp.all(jnp.isfinite(last_hidden)))
    print("KERNEL_OK")
</pallas_src>

<mosaic_0001>
module attributes {stable_mosaic.version = 11 : i64} {
  func.func @_welkir_encoder_kernel(%arg0: i32, %arg1: i32, %arg2: memref<36xf32, #tpu.memory_space<smem>>, %arg3: memref<16x32xf32, #tpu.memory_space<vmem>>, %arg4: memref<2x1x8xf32, #tpu.memory_space<vmem>>, %arg5: memref<2x8x8xi32, #tpu.memory_space<vmem>>, %arg6: memref<2x8x8xi32, #tpu.memory_space<vmem>>, %arg7: memref<2x8x8xi32, #tpu.memory_space<vmem>>, %arg8: memref<1x32x96xbf16, #tpu.memory_space<vmem>>, %arg9: memref<1x1x96xf32, #tpu.memory_space<vmem>>, %arg10: memref<1x32x32xbf16, #tpu.memory_space<vmem>>, %arg11: memref<1x1x32xf32, #tpu.memory_space<vmem>>, %arg12: memref<1x1x32xf32, #tpu.memory_space<vmem>>, %arg13: memref<1x1x32xf32, #tpu.memory_space<vmem>>, %arg14: memref<1x32x64xbf16, #tpu.memory_space<vmem>>, %arg15: memref<1x1x64xf32, #tpu.memory_space<vmem>>, %arg16: memref<1x64x32xbf16, #tpu.memory_space<vmem>>, %arg17: memref<1x1x32xf32, #tpu.memory_space<vmem>>, %arg18: memref<1x1x32xf32, #tpu.memory_space<vmem>>, %arg19: memref<1x1x32xf32, #tpu.memory_space<vmem>>, %arg20: memref<1x16x32xf32, #tpu.memory_space<vmem>>, %arg21: memref<16x32xf32, #tpu.memory_space<vmem>>) attributes {dimension_semantics = [#tpu.dimension_semantics<parallel>, #tpu.dimension_semantics<arbitrary>], iteration_bounds = array<i64: 1, 2>, scalar_prefetch = 0 : i64, scratch_operands = 1 : i64, tpu.core_type = #tpu.core_type<tc>, window_params = [{transform_indices = @transform_0, window_bounds = array<i64: 36>}, {transform_indices = @transform_1, window_bounds = array<i64: 16, 32>}, {transform_indices = @transform_2, window_bounds = array<i64: 2, 1, 8>}, {transform_indices = @transform_3, window_bounds = array<i64: 2, 8, 8>}, {transform_indices = @transform_4, window_bounds = array<i64: 2, 8, 8>}, {transform_indices = @transform_5, window_bounds = array<i64: 2, 8, 8>}, {transform_indices = @transform_6, window_bounds = array<i64: 1, 32, 96>}, {transform_indices = @transform_7, window_bounds = array<i64: 1, 1, 96>}, {transform_indices = @transform_8, window_bounds = array<i64: 1, 32, 32>}, {transform_indices = @transform_9, window_bounds = array<i64: 1, 1, 32>}, {transform_indices = @transform_10, window_bounds = array<i64: 1, 1, 32>}, {transform_indices = @transform_11, window_bounds = array<i64: 1, 1, 32>}, {transform_indices = @transform_12, window_bounds = array<i64: 1, 32, 64>}, {transform_indices = @transform_13, window_bounds = array<i64: 1, 1, 64>}, {transform_indices = @transform_14, window_bounds = array<i64: 1, 64, 32>}, {transform_indices = @transform_15, window_bounds = array<i64: 1, 1, 32>}, {transform_indices = @transform_16, window_bounds = array<i64: 1, 1, 32>}, {transform_indices = @transform_17, window_bounds = array<i64: 1, 1, 32>}, {transform_indices = @transform_18, window_bounds = array<i64: 1, 16, 32>}]} {
    %c0_i32 = arith.constant 0 : i32
    %0 = arith.cmpi eq, %arg1, %c0_i32 : i32
    %1 = arith.extui %0 : i1 to i32
    %c0_i32_0 = arith.constant 0 : i32
    %2 = arith.cmpi ne, %1, %c0_i32_0 : i32
    scf.if %2 {
      %c0_239 = arith.constant 0 : index
      %c0_240 = arith.constant 0 : index
      %574 = vector.load %arg3[%c0_239, %c0_240] : memref<16x32xf32, #tpu.memory_space<vmem>>, vector<16x32xf32>
      %c0_241 = arith.constant 0 : index
      %c0_242 = arith.constant 0 : index
      %575 = vector.load %arg21[%c0_241, %c0_242] : memref<16x32xf32, #tpu.memory_space<vmem>>, vector<16x32xf32>
      tpu.vector_store %arg21[%c0_241, %c0_242], %574 {strides = array<i32>} : memref<16x32xf32, #tpu.memory_space<vmem>>, vector<16x32xf32>,
    } else {
    }
    %c0 = arith.constant 0 : index
    %c0_1 = arith.constant 0 : index
    %3 = vector.load %arg21[%c0, %c0_1] : memref<16x32xf32, #tpu.memory_space<vmem>>, vector<16x32xf32>
    %4 = arith.truncf %3 : vector<16x32xf32> to vector<16x32xbf16>
    %c0_2 = arith.constant 0 : index
    %c0_3 = arith.constant 0 : index
    %c0_4 = arith.constant 0 : index
    %5 = vector.load %arg8[%c0_2, %c0_3, %c0_4] : memref<1x32x96xbf16, #tpu.memory_space<vmem>>, vector<1x32x96xbf16>
    %6 = vector.shape_cast %5 : vector<1x32x96xbf16> to vector<32x96xbf16>
    %cst = arith.constant dense<0.000000e+00> : vector<16x96xf32>
    %7 = tpu.matmul %4, %6, %cst {dimension_numbers = #tpu.dot_dimension_numbers<[1], [0], [0], [1], [0, 0, 1, 1], [], []>} : vector<16x32xbf16>, vector<32x96xbf16>, vector<16x96xf32> -> vector<16x96xf32>
    %c0_5 = arith.constant 0 : index
    %c0_6 = arith.constant 0 : index
    %c0_7 = arith.constant 0 : index
    %8 = vector.load %arg9[%c0_5, %c0_6, %c0_7] : memref<1x1x96xf32, #tpu.memory_space<vmem>>, vector<1x1x96xf32>
    %9 = vector.shape_cast %8 : vector<1x1x96xf32> to vector<1x96xf32>
    %10 = vector.broadcast %9 : vector<1x96xf32> to vector<16x96xf32>
    %11 = arith.addf %7, %10 : vector<16x96xf32>
    %12 = arith.truncf %11 : vector<16x96xf32> to vector<16x96xbf16>
    %c3_i32 = arith.constant 3 : i32
    %13 = arith.muli %arg1, %c3_i32 : i32
    %c6_i32 = arith.constant 6 : i32
    %14 = arith.muli %13, %c6_i32 : i32
    %cst_8 = arith.constant 0.000000e+00 : f32
    %15 = vector.broadcast %cst_8 : f32 to vector<8x8xf32>
    %c0_9 = arith.constant 0 : index
    %c0_10 = arith.constant 0 : index
    %c0_11 = arith.constant 0 : index
    %16 = vector.load %arg5[%c0_9, %c0_10, %c0_11] : memref<2x8x8xi32, #tpu.memory_space<vmem>>, vector<1x8x8xi32>
    %17 = vector.shape_cast %16 : vector<1x8x8xi32> to vector<8x8xi32>
    %c1_i32 = arith.constant 1 : i32
    %18 = vector.broadcast %c1_i32 : i32 to vector<8x8xi32>
    %19 = arith.cmpi eq, %17, %18 : vector<8x8xi32>
    %c0_i32_12 = arith.constant 0 : i32
    %20 = arith.addi %14, %c0_i32_12 : i32
    %c1_i32_13 = arith.constant 1 : i32
    %21 = arith.addi %20, %c1_i32_13 : i32
    %22 = arith.index_cast %21 : i32 to index
    %23 = memref.load %arg2[%22] : memref<36xf32, #tpu.memory_space<smem>>
    %cst_14 = arith.constant 0.000000e+00 : f32
    %24 = vector.broadcast %23 : f32 to vector<8x8xf32>
    %25 = vector.broadcast %cst_14 : f32 to vector<8x8xf32>
    %26 = arith.select %19, %24, %25 : vector<8x8xi1>, vector<8x8xf32>
    %27 = arith.addf %15, %26 : vector<8x8xf32>
    %c2_i32 = arith.constant 2 : i32
    %28 = vector.broadcast %c2_i32 : i32 to vector<8x8xi32>
    %29 = arith.cmpi eq, %17, %28 : vector<8x8xi32>
    %c0_i32_15 = arith.constant 0 : i32
    %30 = arith.addi %14, %c0_i32_15 : i32
    %c2_i32_16 = arith.constant 2 : i32
    %31 = arith.addi %30, %c2_i32_16 : i32
    %32 = arith.index_cast %31 : i32 to index
    %33 = memref.load %arg2[%32] : memref<36xf32, #tpu.memory_space<smem>>
    %cst_17 = arith.constant 0.000000e+00 : f32
    %34 = vector.broadcast %33 : f32 to vector<8x8xf32>
    %35 = vector.broadcast %cst_17 : f32 to vector<8x8xf32>
    %36 = arith.select %29, %34, %35 : vector<8x8xi1>, vector<8x8xf32>
    %37 = arith.addf %27, %36 : vector<8x8xf32>
    %c3_i32_18 = arith.constant 3 : i32
    %38 = vector.broadcast %c3_i32_18 : i32 to vector<8x8xi32>
    %39 = arith.cmpi eq, %17, %38 : vector<8x8xi32>
    %c0_i32_19 = arith.constant 0 : i32
    %40 = arith.addi %14, %c0_i32_19 : i32
    %c3_i32_20 = arith.constant 3 : i32
    %41 = arith.addi %40, %c3_i32_20 : i32
    %42 = arith.index_cast %41 : i32 to index
    %43 = memref.load %arg2[%42] : memref<36xf32, #tpu.memory_space<smem>>
    %cst_21 = arith.constant 0.000000e+00 : f32
    %44 = vector.broadcast %43 : f32 to vector<8x8xf32>
    %45 = vector.broadcast %cst_21 : f32 to vector<8x8xf32>
    %46 = arith.select %39, %44, %45 : vector<8x8xi1>, vector<8x8xf32>
    %47 = arith.addf %37, %46 : vector<8x8xf32>
    %c4_i32 = arith.constant 4 : i32
    %48 = vector.broadcast %c4_i32 : i32 to vector<8x8xi32>
    %49 = arith.cmpi eq, %17, %48 : vector<8x8xi32>
    %c0_i32_22 = arith.constant 0 : i32
    %50 = arith.addi %14, %c0_i32_22 : i32
    %c4_i32_23 = arith.constant 4 : i32
    %51 = arith.addi %50, %c4_i32_23 : i32
    %52 = arith.index_cast %51 : i32 to index
    %53 = memref.load %arg2[%52] : memref<36xf32, #tpu.memory_space<smem>>
    %cst_24 = arith.constant 0.000000e+00 : f32
    %54 = vector.broadcast %53 : f32 to vector<8x8xf32>
    %55 = vector.broadcast %cst_24 : f32 to vector<8x8xf32>
    %56 = arith.select %49, %54, %55 : vector<8x8xi1>, vector<8x8xf32>
    %57 = arith.addf %47, %56 : vector<8x8xf32>
    %c5_i32 = arith.constant 5 : i32
    %58 = vector.broadcast %c5_i32 : i32 to vector<8x8xi32>
    %59 = arith.cmpi eq, %17, %58 : vector<8x8xi32>
    %c0_i32_25 = arith.constant 0 : i32
    %60 = arith.addi %14, %c0_i32_25 : i32
    %c5_i32_26 = arith.constant 5 : i32
    %61 = arith.addi %60, %c5_i32_26 : i32
    %62 = arith.index_cast %61 : i32 to index
    %63 = memref.load %arg2[%62] : memref<36xf32, #tpu.memory_space<smem>>
    %cst_27 = arith.constant 0.000000e+00 : f32
    %64 = vector.broadcast %63 : f32 to vector<8x8xf32>
    %65 = vector.broadcast %cst_27 : f32 to vector<8x8xf32>
    %66 = arith.select %59, %64, %65 : vector<8x8xi1>, vector<8x8xf32>
    %67 = arith.addf %57, %66 : vector<8x8xf32>
    %c0_28 = arith.constant 0 : index
    %c0_29 = arith.constant 0 : index
    %c0_30 = arith.constant 0 : index
    %68 = vector.load %arg6[%c0_28, %c0_29, %c0_30] : memref<2x8x8xi32, #tpu.memory_space<vmem>>, vector<1x8x8xi32>
    %69 = vector.shape_cast %68 : vector<1x8x8xi32> to vector<8x8xi32>
    %c1_i32_31 = arith.constant 1 : i32
    %70 = vector.broadcast %c1_i32_31 : i32 to vector<8x8xi32>
    %71 = arith.cmpi eq, %69, %70 : vector<8x8xi32>
    %c6_i32_32 = arith.constant 6 : i32
    %72 = arith.addi %14, %c6_i32_32 : i32
    %c1_i32_33 = arith.constant 1 : i32
    %73 = arith.addi %72, %c1_i32_33 : i32
    %74 = arith.index_cast %73 : i32 to index
    %75 = memref.load %arg2[%74] : memref<36xf32, #tpu.memory_space<smem>>
    %cst_34 = arith.constant 0.000000e+00 : f32
    %76 = vector.broadcast %75 : f32 to vector<8x8xf32>
    %77 = vector.broadcast %cst_34 : f32 to vector<8x8xf32>
    %78 = arith.select %71, %76, %77 : vector<8x8xi1>, vector<8x8xf32>
    %79 = arith.addf %67, %78 : vector<8x8xf32>
    %c2_i32_35 = arith.constant 2 : i32
    %80 = vector.broadcast %c2_i32_35 : i32 to vector<8x8xi32>
    %81 = arith.cmpi eq, %69, %80 : vector<8x8xi32>
    %c6_i32_36 = arith.constant 6 : i32
    %82 = arith.addi %14, %c6_i32_36 : i32
    %c2_i32_37 = arith.constant 2 : i32
    %83 = arith.addi %82, %c2_i32_37 : i32
    %84 = arith.index_cast %83 : i32 to index
    %85 = memref.load %arg2[%84] : memref<36xf32, #tpu.memory_space<smem>>
    %cst_38 = arith.constant 0.000000e+00 : f32
    %86 = vector.broadcast %85 : f32 to vector<8x8xf32>
    %87 = vector.broadcast %cst_38 : f32 to vector<8x8xf32>
    %88 = arith.select %81, %86, %87 : vector<8x8xi1>, vector<8x8xf32>
    %89 = arith.addf %79, %88 : vector<8x8xf32>
    %c3_i32_39 = arith.constant 3 : i32
    %90 = vector.broadcast %c3_i32_39 : i32 to vector<8x8xi32>
    %91 = arith.cmpi eq, %69, %90 : vector<8x8xi32>
    %c6_i32_40 = arith.constant 6 : i32
    %92 = arith.addi %14, %c6_i32_40 : i32
    %c3_i32_41 = arith.constant 3 : i32
    %93 = arith.addi %92, %c3_i32_41 : i32
    %94 = arith.index_cast %93 : i32 to index
    %95 = memref.load %arg2[%94] : memref<36xf32, #tpu.memory_space<smem>>
    %cst_42 = arith.constant 0.000000e+00 : f32
    %96 = vector.broadcast %95 : f32 to vector<8x8xf32>
    %97 = vector.broadcast %cst_42 : f32 to vector<8x8xf32>
    %98 = arith.select %91, %96, %97 : vector<8x8xi1>, vector<8x8xf32>
    %99 = arith.addf %89, %98 : vector<8x8xf32>
    %c4_i32_43 = arith.constant 4 : i32
    %100 = vector.broadcast %c4_i32_43 : i32 to vector<8x8xi32>
    %101 = arith.cmpi eq, %69, %100 : vector<8x8xi32>
    %c6_i32_44 = arith.constant 6 : i32
    %102 = arith.addi %14, %c6_i32_44 : i32
    %c4_i32_45 = arith.constant 4 : i32
    %103 = arith.addi %102, %c4_i32_45 : i32
    %104 = arith.index_cast %103 : i32 to index
    %105 = memref.load %arg2[%104] : memref<36xf32, #tpu.memory_space<smem>>
    %cst_46 = arith.constant 0.000000e+00 : f32
    %106 = vector.broadcast %105 : f32 to vector<8x8xf32>
    %107 = vector.broadcast %cst_46 : f32 to vector<8x8xf32>
    %108 = arith.select %101, %106, %107 : vector<8x8xi1>, vector<8x8xf32>
    %109 = arith.addf %99, %108 : vector<8x8xf32>
    %c5_i32_47 = arith.constant 5 : i32
    %110 = vector.broadcast %c5_i32_47 : i32 to vector<8x8xi32>
    %111 = arith.cmpi eq, %69, %110 : vector<8x8xi32>
    %c6_i32_48 = arith.constant 6 : i32
    %112 = arith.addi %14, %c6_i32_48 : i32
    %c5_i32_49 = arith.constant 5 : i32
    %113 = arith.addi %112, %c5_i32_49 : i32
    %114 = arith.index_cast %113 : i32 to index
    %115 = memref.load %arg2[%114] : memref<36xf32, #tpu.memory_space<smem>>
    %cst_50 = arith.constant 0.000000e+00 : f32
    %116 = vector.broadcast %115 : f32 to vector<8x8xf32>
    %117 = vector.broadcast %cst_50 : f32 to vector<8x8xf32>
    %118 = arith.select %111, %116, %117 : vector<8x8xi1>, vector<8x8xf32>
    %119 = arith.addf %109, %118 : vector<8x8xf32>
    %c0_51 = arith.constant 0 : index
    %c0_52 = arith.constant 0 : index
    %c0_53 = arith.constant 0 : index
    %120 = vector.load %arg7[%c0_51, %c0_52, %c0_53] : memref<2x8x8xi32, #tpu.memory_space<vmem>>, vector<1x8x8xi32>
    %121 = vector.shape_cast %120 : vector<1x8x8xi32> to vector<8x8xi32>
    %c1_i32_54 = arith.constant 1 : i32
    %122 = vector.broadcast %c1_i32_54 : i32 to vector<8x8xi32>
    %123 = arith.cmpi eq, %121, %122 : vector<8x8xi32>
    %c12_i32 = arith.constant 12 : i32
    %124 = arith.addi %14, %c12_i32 : i32
    %c1_i32_55 = arith.constant 1 : i32
    %125 = arith.addi %124, %c1_i32_55 : i32
    %126 = arith.index_cast %125 : i32 to index
    %127 = memref.load %arg2[%126] : memref<36xf32, #tpu.memory_space<smem>>
    %cst_56 = arith.constant 0.000000e+00 : f32
    %128 = vector.broadcast %127 : f32 to vector<8x8xf32>
    %129 = vector.broadcast %cst_56 : f32 to vector<8x8xf32>
    %130 = arith.select %123, %128, %129 : vector<8x8xi1>, vector<8x8xf32>
    %131 = arith.addf %119, %130 : vector<8x8xf32>
    %c2_i32_57 = arith.constant 2 : i32
    %132 = vector.broadcast %c2_i32_57 : i32 to vector<8x8xi32>
    %133 = arith.cmpi eq, %121, %132 : vector<8x8xi32>
    %c12_i32_58 = arith.constant 12 : i32
    %134 = arith.addi %14, %c12_i32_58 : i32
    %c2_i32_59 = arith.constant 2 : i32
    %135 = arith.addi %134, %c2_i32_59 : i32
    %136 = arith.index_cast %135 : i32 to index
    %137 = memref.load %arg2[%136] : memref<36xf32, #tpu.memory_space<smem>>
    %cst_60 = arith.constant 0.000000e+00 : f32
    %138 = vector.broadcast %137 : f32 to vector<8x8xf32>
    %139 = vector.broadcast %cst_60 : f32 to vector<8x8xf32>
    %140 = arith.select %133, %138, %139 : vector<8x8xi1>, vector<8x8xf32>
    %141 = arith.addf %131, %140 : vector<8x8xf32>
    %c3_i32_61 = arith.constant 3 : i32
    %142 = vector.broadcast %c3_i32_61 : i32 to vector<8x8xi32>
    %143 = arith.cmpi eq, %121, %142 : vector<8x8xi32>
    %c12_i32_62 = arith.constant 12 : i32
    %144 = arith.addi %14, %c12_i32_62 : i32
    %c3_i32_63 = arith.constant 3 : i32
    %145 = arith.addi %144, %c3_i32_63 : i32
    %146 = arith.index_cast %145 : i32 to index
    %147 = memref.load %arg2[%146] : memref<36xf32, #tpu.memory_space<smem>>
    %cst_64 = arith.constant 0.000000e+00 : f32
    %148 = vector.broadcast %147 : f32 to vector<8x8xf32>
    %149 = vector.broadcast %cst_64 : f32 to vector<8x8xf32>
    %150 = arith.select %143, %148, %149 : vector<8x8xi1>, vector<8x8xf32>
    %151 = arith.addf %141, %150 : vector<8x8xf32>
    %c4_i32_65 = arith.constant 4 : i32
    %152 = vector.broadcast %c4_i32_65 : i32 to vector<8x8xi32>
    %153 = arith.cmpi eq, %121, %152 : vector<8x8xi32>
    %c12_i32_66 = arith.constant 12 : i32
    %154 = arith.addi %14, %c12_i32_66 : i32
    %c4_i32_67 = arith.constant 4 : i32
    %155 = arith.addi %154, %c4_i32_67 : i32
    %156 = arith.index_cast %155 : i32 to index
    %157 = memref.load %arg2[%156] : memref<36xf32, #tpu.memory_space<smem>>
    %cst_68 = arith.constant 0.000000e+00 : f32
    %158 = vector.broadcast %157 : f32 to vector<8x8xf32>
    %159 = vector.broadcast %cst_68 : f32 to vector<8x8xf32>
    %160 = arith.select %153, %158, %159 : vector<8x8xi1>, vector<8x8xf32>
    %161 = arith.addf %151, %160 : vector<8x8xf32>
    %c5_i32_69 = arith.constant 5 : i32
    %162 = vector.broadcast %c5_i32_69 : i32 to vector<8x8xi32>
    %163 = arith.cmpi eq, %121, %162 : vector<8x8xi32>
    %c12_i32_70 = arith.constant 12 : i32
    %164 = arith.addi %14, %c12_i32_70 : i32
    %c5_i32_71 = arith.constant 5 : i32
    %165 = arith.addi %164, %c5_i32_71 : i32
    %166 = arith.index_cast %165 : i32 to index
    %167 = memref.load %arg2[%166] : memref<36xf32, #tpu.memory_space<smem>>
    %cst_72 = arith.constant 0.000000e+00 : f32
    %168 = vector.broadcast %167 : f32 to vector<8x8xf32>
    %169 = vector.broadcast %cst_72 : f32 to vector<8x8xf32>
    %170 = arith.select %163, %168, %169 : vector<8x8xi1>, vector<8x8xf32>
    %171 = arith.addf %161, %170 : vector<8x8xf32>
    %c0_73 = arith.constant 0 : index
    %c0_74 = arith.constant 0 : index
    %c0_75 = arith.constant 0 : index
    %172 = vector.load %arg4[%c0_73, %c0_74, %c0_75] : memref<2x1x8xf32, #tpu.memory_space<vmem>>, vector<1x1x8xf32>
    %173 = vector.shape_cast %172 : vector<1x1x8xf32> to vector<1x8xf32>
    %174 = vector.broadcast %173 : vector<1x8xf32> to vector<8x8xf32>
    %175 = arith.addf %171, %174 : vector<8x8xf32>
    %176 = vector.extract_strided_slice %12 {offsets = [0, 0], sizes = [8, 8], strides = [1, 1]} : vector<16x96xbf16> to vector<8x8xbf16>
    %177 = vector.extract_strided_slice %12 {offsets = [0, 32], sizes = [8, 8], strides = [1, 1]} : vector<16x96xbf16> to vector<8x8xbf16>
    %178 = vector.extract_strided_slice %12 {offsets = [0, 64], sizes = [8, 8], strides = [1, 1]} : vector<16x96xbf16> to vector<8x8xbf16>
    %cst_76 = arith.constant dense<0.000000e+00> : vector<8x8xf32>
    %179 = tpu.matmul %176, %177, %cst_76 {dimension_numbers = #tpu.dot_dimension_numbers<[1], [1], [0], [0], [0, 0, 1, 0], [], []>} : vector<8x8xbf16>, vector<8x8xbf16>, vector<8x8xf32> -> vector<8x8xf32>
    %cst_77 = arith.constant 0.353553385 : f32
    %180 = vector.broadcast %cst_77 : f32 to vector<8x8xf32>
    %181 = arith.mulf %179, %180 : vector<8x8xf32>
    %182 = arith.addf %181, %175 : vector<8x8xf32>
    %cst_78 = arith.constant dense<0xFF800000> : vector<8xf32>
    %183 = vector.multi_reduction <maximumf>, %182, %cst_78 [1] : vector<8x8xf32> to vector<8xf32>
    %184 = vector.shape_cast %183 : vector<8xf32> to vector<8x1xf32>
    %185 = vector.broadcast %184 : vector<8x1xf32> to vector<8x8xf32>
    %186 = arith.subf %182, %185 : vector<8x8xf32>
    %187 = math.exp %186 : vector<8x8xf32>
    %cst_79 = arith.constant dense<0.000000e+00> : vector<8xf32>
    %188 = vector.multi_reduction <add>, %187, %cst_79 [1] : vector<8x8xf32> to vector<8xf32>
    %189 = vector.shape_cast %188 : vector<8xf32> to vector<8x1xf32>
    %190 = vector.broadcast %189 : vector<8x1xf32> to vector<8x8xf32>
    %191 = arith.divf %187, %190 : vector<8x8xf32>
    %192 = arith.truncf %191 : vector<8x8xf32> to vector<8x8xbf16>
    %cst_80 = arith.constant dense<0.000000e+00> : vector<8x8xf32>
    %193 = tpu.matmul %192, %178, %cst_80 {dimension_numbers = #tpu.dot_dimension_numbers<[1], [0], [0], [1], [0, 0, 1, 1], [], []>} : vector<8x8xbf16>, vector<8x8xbf16>, vector<8x8xf32> -> vector<8x8xf32>
    %194 = vector.extract_strided_slice %12 {offsets = [0, 8], sizes = [8, 8], strides = [1, 1]} : vector<16x96xbf16> to vector<8x8xbf16>
    %195 = vector.extract_strided_slice %12 {offsets = [0, 40], sizes = [8, 8], strides = [1, 1]} : vector<16x96xbf16> to vector<8x8xbf16>
    %196 = vector.extract_strided_slice %12 {offsets = [0, 72], sizes = [8, 8], strides = [1, 1]} : vector<16x96xbf16> to vector<8x8xbf16>
    %cst_81 = arith.constant dense<0.000000e+00> : vector<8x8xf32>
    %197 = tpu.matmul %194, %195, %cst_81 {dimension_numbers = #tpu.dot_dimension_numbers<[1], [1], [0], [0], [0, 0, 1, 0], [], []>} : vector<8x8xbf16>, vector<8x8xbf16>, vector<8x8xf32> -> vector<8x8xf32>
    %cst_82 = arith.constant 0.353553385 : f32
    %198 = vector.broadcast %cst_82 : f32 to vector<8x8xf32>
    %199 = arith.mulf %197, %198 : vector<8x8xf32>
    %200 = arith.addf %199, %175 : vector<8x8xf32>
    %cst_83 = arith.constant dense<0xFF800000> : vector<8xf32>
    %201 = vector.multi_reduction <maximumf>, %200, %cst_83 [1] : vector<8x8xf32> to vector<8xf32>
    %202 = vector.shape_cast %201 : vector<8xf32> to vector<8x1xf32>
    %203 = vector.broadcast %202 : vector<8x1xf32> to vector<8x8xf32>
    %204 = arith.subf %200, %203 : vector<8x8xf32>
    %205 = math.exp %204 : vector<8x8xf32>
    %cst_84 = arith.constant dense<0.000000e+00> : vector<8xf32>
    %206 = vector.multi_reduction <add>, %205, %cst_84 [1] : vector<8x8xf32> to vector<8xf32>
    %207 = vector.shape_cast %206 : vector<8xf32> to vector<8x1xf32>
    %208 = vector.broadcast %207 : vector<8x1xf32> to vector<8x8xf32>
    %209 = arith.divf %205, %208 : vector<8x8xf32>
    %210 = arith.truncf %209 : vector<8x8xf32> to vector<8x8xbf16>
    %cst_85 = arith.constant dense<0.000000e+00> : vector<8x8xf32>
    %211 = tpu.matmul %210, %196, %cst_85 {dimension_numbers = #tpu.dot_dimension_numbers<[1], [0], [0], [1], [0, 0, 1, 1], [], []>} : vector<8x8xbf16>, vector<8x8xbf16>, vector<8x8xf32> -> vector<8x8xf32>
    %212 = vector.extract_strided_slice %12 {offsets = [0, 16], sizes = [8, 8], strides = [1, 1]} : vector<16x96xbf16> to vector<8x8xbf16>
    %213 = vector.extract_strided_slice %12 {offsets = [0, 48], sizes = [8, 8], strides = [1, 1]} : vector<16x96xbf16> to vector<8x8xbf16>
    %214 = vector.extract_strided_slice %12 {offsets = [0, 80], sizes = [8, 8], strides = [1, 1]} : vector<16x96xbf16> to vector<8x8xbf16>
    %cst_86 = arith.constant dense<0.000000e+00> : vector<8x8xf32>
    %215 = tpu.matmul %212, %213, %cst_86 {dimension_numbers = #tpu.dot_dimension_numbers<[1], [1], [0], [0], [0, 0, 1, 0], [], []>} : vector<8x8xbf16>, vector<8x8xbf16>, vector<8x8xf32> -> vector<8x8xf32>
    %cst_87 = arith.constant 0.353553385 : f32
    %216 = vector.broadcast %cst_87 : f32 to vector<8x8xf32>
    %217 = arith.mulf %215, %216 : vector<8x8xf32>
    %218 = arith.addf %217, %175 : vector<8x8xf32>
    %cst_88 = arith.constant dense<0xFF800000> : vector<8xf32>
    %219 = vector.multi_reduction <maximumf>, %218, %cst_88 [1] : vector<8x8xf32> to vector<8xf32>
    %220 = vector.shape_cast %219 : vector<8xf32> to vector<8x1xf32>
    %221 = vector.broadcast %220 : vector<8x1xf32> to vector<8x8xf32>
    %222 = arith.subf %218, %221 : vector<8x8xf32>
    %223 = math.exp %222 : vector<8x8xf32>
    %cst_89 = arith.constant dense<0.000000e+00> : vector<8xf32>
    %224 = vector.multi_reduction <add>, %223, %cst_89 [1] : vector<8x8xf32> to vector<8xf32>
    %225 = vector.shape_cast %224 : vector<8xf32> to vector<8x1xf32>
    %226 = vector.broadcast %225 : vector<8x1xf32> to vector<8x8xf32>
    %227 = arith.divf %223, %226 : vector<8x8xf32>
    %228 = arith.truncf %227 : vector<8x8xf32> to vector<8x8xbf16>
    %cst_90 = arith.constant dense<0.000000e+00> : vector<8x8xf32>
    %229 = tpu.matmul %228, %214, %cst_90 {dimension_numbers = #tpu.dot_dimension_numbers<[1], [0], [0], [1], [0, 0, 1, 1], [], []>} : vector<8x8xbf16>, vector<8x8xbf16>, vector<8x8xf32> -> vector<8x8xf32>
    %230 = vector.extract_strided_slice %12 {offsets = [0, 24], sizes = [8, 8], strides = [1, 1]} : vector<16x96xbf16> to vector<8x8xbf16>
    %231 = vector.extract_strided_slice %12 {offsets = [0, 56], sizes = [8, 8], strides = [1, 1]} : vector<16x96xbf16> to vector<8x8xbf16>
    %232 = vector.extract_strided_slice %12 {offsets = [0, 88], sizes = [8, 8], strides = [1, 1]} : vector<16x96xbf16> to vector<8x8xbf16>
    %cst_91 = arith.constant dense<0.000000e+00> : vector<8x8xf32>
    %233 = tpu.matmul %230, %231, %cst_91 {dimension_numbers = #tpu.dot_dimension_numbers<[1], [1], [0], [0], [0, 0, 1, 0], [], []>} : vector<8x8xbf16>, vector<8x8xbf16>, vector<8x8xf32> -> vector<8x8xf32>
    %cst_92 = arith.constant 0.353553385 : f32
    %234 = vector.broadcast %cst_92 : f32 to vector<8x8xf32>
    %235 = arith.mulf %233, %234 : vector<8x8xf32>
    %236 = arith.addf %235, %175 : vector<8x8xf32>
    %cst_93 = arith.constant dense<0xFF800000> : vector<8xf32>
    %237 = vector.multi_reduction <maximumf>, %236, %cst_93 [1] : vector<8x8xf32> to vector<8xf32>
    %238 = vector.shape_cast %237 : vector<8xf32> to vector<8x1xf32>
    %239 = vector.broadcast %238 : vector<8x1xf32> to vector<8x8xf32>
    %240 = arith.subf %236, %239 : vector<8x8xf32>
    %241 = math.exp %240 : vector<8x8xf32>
    %cst_94 = arith.constant dense<0.000000e+00> : vector<8xf32>
    %242 = vector.multi_reduction <add>, %241, %cst_94 [1] : vector<8x8xf32> to vector<8xf32>
    %243 = vector.shape_cast %242 : vector<8xf32> to vector<8x1xf32>
    %244 = vector.broadcast %243 : vector<8x1xf32> to vector<8x8xf32>
    %245 = arith.divf %241, %244 : vector<8x8xf32>
    %246 = arith.truncf %245 : vector<8x8xf32> to vector<8x8xbf16>
    %cst_95 = arith.constant dense<0.000000e+00> : vector<8x8xf32>
    %247 = tpu.matmul %246, %232, %cst_95 {dimension_numbers = #tpu.dot_dimension_numbers<[1], [0], [0], [1], [0, 0, 1, 1], [], []>} : vector<8x8xbf16>, vector<8x8xbf16>, vector<8x8xf32> -> vector<8x8xf32>
    %248 = tpu.concatenate %193, %211, %229, %247 in 1 : vector<8x8xf32>, vector<8x8xf32>, vector<8x8xf32>, vector<8x8xf32> -> vector<8x32xf32>
    %cst_96 = arith.constant 0.000000e+00 : f32
    %249 = vector.broadcast %cst_96 : f32 to vector<8x8xf32>
    %c1 = arith.constant 1 : index
    %c0_97 = arith.constant 0 : index
    %c0_98 = arith.constant 0 : index
    %250 = vector.load %arg5[%c1, %c0_97, %c0_98] : memref<2x8x8xi32, #tpu.memory_space<vmem>>, vector<1x8x8xi32>
    %251 = vector.shape_cast %250 : vector<1x8x8xi32> to vector<8x8xi32>
    %c1_i32_99 = arith.constant 1 : i32
    %252 = vector.broadcast %c1_i32_99 : i32 to vector<8x8xi32>
    %253 = arith.cmpi eq, %251, %252 : vector<8x8xi32>
    %c0_i32_100 = arith.constant 0 : i32
    %254 = arith.addi %14, %c0_i32_100 : i32
    %c1_i32_101 = arith.constant 1 : i32
    %255 = arith.addi %254, %c1_i32_101 : i32
    %256 = arith.index_cast %255 : i32 to index
    %257 = memref.load %arg2[%256] : memref<36xf32, #tpu.memory_space<smem>>
    %cst_102 = arith.constant 0.000000e+00 : f32
    %258 = vector.broadcast %257 : f32 to vector<8x8xf32>
    %259 = vector.broadcast %cst_102 : f32 to vector<8x8xf32>
    %260 = arith.select %253, %258, %259 : vector<8x8xi1>, vector<8x8xf32>
    %261 = arith.addf %249, %260 : vector<8x8xf32>
    %c2_i32_103 = arith.constant 2 : i32
    %262 = vector.broadcast %c2_i32_103 : i32 to vector<8x8xi32>
    %263 = arith.cmpi eq, %251, %262 : vector<8x8xi32>
    %c0_i32_104 = arith.constant 0 : i32
    %264 = arith.addi %14, %c0_i32_104 : i32
    %c2_i32_105 = arith.constant 2 : i32
    %265 = arith.addi %264, %c2_i32_105 : i32
    %266 = arith.index_cast %265 : i32 to index
    %267 = memref.load %arg2[%266] : memref<36xf32, #tpu.memory_space<smem>>
    %cst_106 = arith.constant 0.000000e+00 : f32
    %268 = vector.broadcast %267 : f32 to vector<8x8xf32>
    %269 = vector.broadcast %cst_106 : f32 to vector<8x8xf32>
    %270 = arith.select %263, %268, %269 : vector<8x8xi1>, vector<8x8xf32>
    %271 = arith.addf %261, %270 : vector<8x8xf32>
    %c3_i32_107 = arith.constant 3 : i32
    %272 = vector.broadcast %c3_i32_107 : i32 to vector<8x8xi32>
    %273 = arith.cmpi eq, %251, %272 : vector<8x8xi32>
    %c0_i32_108 = arith.constant 0 : i32
    %274 = arith.addi %14, %c0_i32_108 : i32
    %c3_i32_109 = arith.constant 3 : i32
    %275 = arith.addi %274, %c3_i32_109 : i32
    %276 = arith.index_cast %275 : i32 to index
    %277 = memref.load %arg2[%276] : memref<36xf32, #tpu.memory_space<smem>>
    %cst_110 = arith.constant 0.000000e+00 : f32
    %278 = vector.broadcast %277 : f32 to vector<8x8xf32>
    %279 = vector.broadcast %cst_110 : f32 to vector<8x8xf32>
    %280 = arith.select %273, %278, %279 : vector<8x8xi1>, vector<8x8xf32>
    %281 = arith.addf %271, %280 : vector<8x8xf32>
    %c4_i32_111 = arith.constant 4 : i32
    %282 = vector.broadcast %c4_i32_111 : i32 to vector<8x8xi32>
    %283 = arith.cmpi eq, %251, %282 : vector<8x8xi32>
    %c0_i32_112 = arith.constant 0 : i32
    %284 = arith.addi %14, %c0_i32_112 : i32
    %c4_i32_113 = arith.constant 4 : i32
    %285 = arith.addi %284, %c4_i32_113 : i32
    %286 = arith.index_cast %285 : i32 to index
    %287 = memref.load %arg2[%286] : memref<36xf32, #tpu.memory_space<smem>>
    %cst_114 = arith.constant 0.000000e+00 : f32
    %288 = vector.broadcast %287 : f32 to vector<8x8xf32>
    %289 = vector.broadcast %cst_114 : f32 to vector<8x8xf32>
    %290 = arith.select %283, %288, %289 : vector<8x8xi1>, vector<8x8xf32>
    %291 = arith.addf %281, %290 : vector<8x8xf32>
    %c5_i32_115 = arith.constant 5 : i32
    %292 = vector.broadcast %c5_i32_115 : i32 to vector<8x8xi32>
    %293 = arith.cmpi eq, %251, %292 : vector<8x8xi32>
    %c0_i32_116 = arith.constant 0 : i32
    %294 = arith.addi %14, %c0_i32_116 : i32
    %c5_i32_117 = arith.constant 5 : i32
    %295 = arith.addi %294, %c5_i32_117 : i32
    %296 = arith.index_cast %295 : i32 to index
    %297 = memref.load %arg2[%296] : memref<36xf32, #tpu.memory_space<smem>>
    %cst_118 = arith.constant 0.000000e+00 : f32
    %298 = vector.broadcast %297 : f32 to vector<8x8xf32>
    %299 = vector.broadcast %cst_118 : f32 to vector<8x8xf32>
    %300 = arith.select %293, %298, %299 : vector<8x8xi1>, vector<8x8xf32>
    %301 = arith.addf %291, %300 : vector<8x8xf32>
    %c1_119 = arith.constant 1 : index
    %c0_120 = arith.constant 0 : index
    %c0_121 = arith.constant 0 : index
    %302 = vector.load %arg6[%c1_119, %c0_120, %c0_121] : memref<2x8x8xi32, #tpu.memory_space<vmem>>, vector<1x8x8xi32>
    %303 = vector.shape_cast %302 : vector<1x8x8xi32> to vector<8x8xi32>
    %c1_i32_122 = arith.constant 1 : i32
    %304 = vector.broadcast %c1_i32_122 : i32 to vector<8x8xi32>
    %305 = arith.cmpi eq, %303, %304 : vector<8x8xi32>
    %c6_i32_123 = arith.constant 6 : i32
    %306 = arith.addi %14, %c6_i32_123 : i32
    %c1_i32_124 = arith.constant 1 : i32
    %307 = arith.addi %306, %c1_i32_124 : i32
    %308 = arith.index_cast %307 : i32 to index
    %309 = memref.load %arg2[%308] : memref<36xf32, #tpu.memory_space<smem>>
    %cst_125 = arith.constant 0.000000e+00 : f32
    %310 = vector.broadcast %309 : f32 to vector<8x8xf32>
    %311 = vector.broadcast %cst_125 : f32 to vector<8x8xf32>
    %312 = arith.select %305, %310, %311 : vector<8x8xi1>, vector<8x8xf32>
    %313 = arith.addf %301, %312 : vector<8x8xf32>
    %c2_i32_126 = arith.constant 2 : i32
    %314 = vector.broadcast %c2_i32_126 : i32 to vector<8x8xi32>
    %315 = arith.cmpi eq, %303, %314 : vector<8x8xi32>
    %c6_i32_127 = arith.constant 6 : i32
    %316 = arith.addi %14, %c6_i32_127 : i32
    %c2_i32_128 = arith.constant 2 : i32
    %317 = arith.addi %316, %c2_i32_128 : i32
    %318 = arith.index_cast %317 : i32 to index
    %319 = memref.load %arg2[%318] : memref<36xf32, #tpu.memory_space<smem>>
    %cst_129 = arith.constant 0.000000e+00 : f32
    %320 = vector.broadcast %319 : f32 to vector<8x8xf32>
    %321 = vector.broadcast %cst_129 : f32 to vector<8x8xf32>
    %322 = arith.select %315, %320, %321 : vector<8x8xi1>, vector<8x8xf32>
    %323 = arith.addf %313, %322 : vector<8x8xf32>
    %c3_i32_130 = arith.constant 3 : i32
    %324 = vector.broadcast %c3_i32_130 : i32 to vector<8x8xi32>
    %325 = arith.cmpi eq, %303, %324 : vector<8x8xi32>
    %c6_i32_131 = arith.constant 6 : i32
    %326 = arith.addi %14, %c6_i32_131 : i32
    %c3_i32_132 = arith.constant 3 : i32
    %327 = arith.addi %326, %c3_i32_132 : i32
    %328 = arith.index_cast %327 : i32 to index
    %329 = memref.load %arg2[%328] : memref<36xf32, #tpu.memory_space<smem>>
    %cst_133 = arith.constant 0.000000e+00 : f32
    %330 = vector.broadcast %329 : f32 to vector<8x8xf32>
    %331 = vector.broadcast %cst_133 : f32 to vector<8x8xf32>
    %332 = arith.select %325, %330, %331 : vector<8x8xi1>, vector<8x8xf32>
    %333 = arith.addf %323, %332 : vector<8x8xf32>
    %c4_i32_134 = arith.constant 4 : i32
    %334 = vector.broadcast %c4_i32_134 : i32 to vector<8x8xi32>
    %335 = arith.cmpi eq, %303, %334 : vector<8x8xi32>
    %c6_i32_135 = arith.constant 6 : i32
    %336 = arith.addi %14, %c6_i32_135 : i32
    %c4_i32_136 = arith.constant 4 : i32
    %337 = arith.addi %336, %c4_i32_136 : i32
    %338 = arith.index_cast %337 : i32 to index
    %339 = memref.load %arg2[%338] : memref<36xf32, #tpu.memory_space<smem>>
    %cst_137 = arith.constant 0.000000e+00 : f32
    %340 = vector.broadcast %339 : f32 to vector<8x8xf32>
    %341 = vector.broadcast %cst_137 : f32 to vector<8x8xf32>
    %342 = arith.select %335, %340, %341 : vector<8x8xi1>, vector<8x8xf32>
    %343 = arith.addf %333, %342 : vector<8x8xf32>
    %c5_i32_138 = arith.constant 5 : i32
    %344 = vector.broadcast %c5_i32_138 : i32 to vector<8x8xi32>
    %345 = arith.cmpi eq, %303, %344 : vector<8x8xi32>
    %c6_i32_139 = arith.constant 6 : i32
    %346 = arith.addi %14, %c6_i32_139 : i32
    %c5_i32_140 = arith.constant 5 : i32
    %347 = arith.addi %346, %c5_i32_140 : i32
    %348 = arith.index_cast %347 : i32 to index
    %349 = memref.load %arg2[%348] : memref<36xf32, #tpu.memory_space<smem>>
    %cst_141 = arith.constant 0.000000e+00 : f32
    %350 = vector.broadcast %349 : f32 to vector<8x8xf32>
    %351 = vector.broadcast %cst_141 : f32 to vector<8x8xf32>
    %352 = arith.select %345, %350, %351 : vector<8x8xi1>, vector<8x8xf32>
    %353 = arith.addf %343, %352 : vector<8x8xf32>
    %c1_142 = arith.constant 1 : index
    %c0_143 = arith.constant 0 : index
    %c0_144 = arith.constant 0 : index
    %354 = vector.load %arg7[%c1_142, %c0_143, %c0_144] : memref<2x8x8xi32, #tpu.memory_space<vmem>>, vector<1x8x8xi32>
    %355 = vector.shape_cast %354 : vector<1x8x8xi32> to vector<8x8xi32>
    %c1_i32_145 = arith.constant 1 : i32
    %356 = vector.broadcast %c1_i32_145 : i32 to vector<8x8xi32>
    %357 = arith.cmpi eq, %355, %356 : vector<8x8xi32>
    %c12_i32_146 = arith.constant 12 : i32
    %358 = arith.addi %14, %c12_i32_146 : i32
    %c1_i32_147 = arith.constant 1 : i32
    %359 = arith.addi %358, %c1_i32_147 : i32
    %360 = arith.index_cast %359 : i32 to index
    %361 = memref.load %arg2[%360] : memref<36xf32, #tpu.memory_space<smem>>
    %cst_148 = arith.constant 0.000000e+00 : f32
    %362 = vector.broadcast %361 : f32 to vector<8x8xf32>
    %363 = vector.broadcast %cst_148 : f32 to vector<8x8xf32>
    %364 = arith.select %357, %362, %363 : vector<8x8xi1>, vector<8x8xf32>
    %365 = arith.addf %353, %364 : vector<8x8xf32>
    %c2_i32_149 = arith.constant 2 : i32
    %366 = vector.broadcast %c2_i32_149 : i32 to vector<8x8xi32>
    %367 = arith.cmpi eq, %355, %366 : vector<8x8xi32>
    %c12_i32_150 = arith.constant 12 : i32
    %368 = arith.addi %14, %c12_i32_150 : i32
    %c2_i32_151 = arith.constant 2 : i32
    %369 = arith.addi %368, %c2_i32_151 : i32
    %370 = arith.index_cast %369 : i32 to index
    %371 = memref.load %arg2[%370] : memref<36xf32, #tpu.memory_space<smem>>
    %cst_152 = arith.constant 0.000000e+00 : f32
    %372 = vector.broadcast %371 : f32 to vector<8x8xf32>
    %373 = vector.broadcast %cst_152 : f32 to vector<8x8xf32>
    %374 = arith.select %367, %372, %373 : vector<8x8xi1>, vector<8x8xf32>
    %375 = arith.addf %365, %374 : vector<8x8xf32>
    %c3_i32_153 = arith.constant 3 : i32
    %376 = vector.broadcast %c3_i32_153 : i32 to vector<8x8xi32>
    %377 = arith.cmpi eq, %355, %376 : vector<8x8xi32>
    %c12_i32_154 = arith.constant 12 : i32
    %378 = arith.addi %14, %c12_i32_154 : i32
    %c3_i32_155 = arith.constant 3 : i32
    %379 = arith.addi %378, %c3_i32_155 : i32
    %380 = arith.index_cast %379 : i32 to index
    %381 = memref.load %arg2[%380] : memref<36xf32, #tpu.memory_space<smem>>
    %cst_156 = arith.constant 0.000000e+00 : f32
    %382 = vector.broadcast %381 : f32 to vector<8x8xf32>
    %383 = vector.broadcast %cst_156 : f32 to vector<8x8xf32>
    %384 = arith.select %377, %382, %383 : vector<8x8xi1>, vector<8x8xf32>
    %385 = arith.addf %375, %384 : vector<8x8xf32>
    %c4_i32_157 = arith.constant 4 : i32
    %386 = vector.broadcast %c4_i32_157 : i32 to vector<8x8xi32>
    %387 = arith.cmpi eq, %355, %386 : vector<8x8xi32>
    %c12_i32_158 = arith.constant 12 : i32
    %388 = arith.addi %14, %c12_i32_158 : i32
    %c4_i32_159 = arith.constant 4 : i32
    %389 = arith.addi %388, %c4_i32_159 : i32
    %390 = arith.index_cast %389 : i32 to index
    %391 = memref.load %arg2[%390] : memref<36xf32, #tpu.memory_space<smem>>
    %cst_160 = arith.constant 0.000000e+00 : f32
    %392 = vector.broadcast %391 : f32 to vector<8x8xf32>
    %393 = vector.broadcast %cst_160 : f32 to vector<8x8xf32>
    %394 = arith.select %387, %392, %393 : vector<8x8xi1>, vector<8x8xf32>
    %395 = arith.addf %385, %394 : vector<8x8xf32>
    %c5_i32_161 = arith.constant 5 : i32
    %396 = vector.broadcast %c5_i32_161 : i32 to vector<8x8xi32>
    %397 = arith.cmpi eq, %355, %396 : vector<8x8xi32>
    %c12_i32_162 = arith.constant 12 : i32
    %398 = arith.addi %14, %c12_i32_162 : i32
    %c5_i32_163 = arith.constant 5 : i32
    %399 = arith.addi %398, %c5_i32_163 : i32
    %400 = arith.index_cast %399 : i32 to index
    %401 = memref.load %arg2[%400] : memref<36xf32, #tpu.memory_space<smem>>
    %cst_164 = arith.constant 0.000000e+00 : f32
    %402 = vector.broadcast %401 : f32 to vector<8x8xf32>
    %403 = vector.broadcast %cst_164 : f32 to vector<8x8xf32>
    %404 = arith.select %397, %402, %403 : vector<8x8xi1>, vector<8x8xf32>
    %405 = arith.addf %395, %404 : vector<8x8xf32>
    %c1_165 = arith.constant 1 : index
    %c0_166 = arith.constant 0 : index
    %c0_167 = arith.constant 0 : index
    %406 = vector.load %arg4[%c1_165, %c0_166, %c0_167] : memref<2x1x8xf32, #tpu.memory_space<vmem>>, vector<1x1x8xf32>
    %407 = vector.shape_cast %406 : vector<1x1x8xf32> to vector<1x8xf32>
    %408 = vector.broadcast %407 : vector<1x8xf32> to vector<8x8xf32>
    %409 = arith.addf %405, %408 : vector<8x8xf32>
    %410 = vector.extract_strided_slice %12 {offsets = [8, 0], sizes = [8, 8], strides = [1, 1]} : vector<16x96xbf16> to vector<8x8xbf16>
    %411 = vector.extract_strided_slice %12 {offsets = [8, 32], sizes = [8, 8], strides = [1, 1]} : vector<16x96xbf16> to vector<8x8xbf16>
    %412 = vector.extract_strided_slice %12 {offsets = [8, 64], sizes = [8, 8], strides = [1, 1]} : vector<16x96xbf16> to vector<8x8xbf16>
    %cst_168 = arith.constant dense<0.000000e+00> : vector<8x8xf32>
    %413 = tpu.matmul %410, %411, %cst_168 {dimension_numbers = #tpu.dot_dimension_numbers<[1], [1], [0], [0], [0, 0, 1, 0], [], []>} : vector<8x8xbf16>, vector<8x8xbf16>, vector<8x8xf32> -> vector<8x8xf32>
    %cst_169 = arith.constant 0.353553385 : f32
    %414 = vector.broadcast %cst_169 : f32 to vector<8x8xf32>
    %415 = arith.mulf %413, %414 : vector<8x8xf32>
    %416 = arith.addf %415, %409 : vector<8x8xf32>
    %cst_170 = arith.constant dense<0xFF800000> : vector<8xf32>
    %417 = vector.multi_reduction <maximumf>, %416, %cst_170 [1] : vector<8x8xf32> to vector<8xf32>
    %418 = vector.shape_cast %417 : vector<8xf32> to vector<8x1xf32>
    %419 = vector.broadcast %418 : vector<8x1xf32> to vector<8x8xf32>
    %420 = arith.subf %416, %419 : vector<8x8xf32>
    %421 = math.exp %420 : vector<8x8xf32>
    %cst_171 = arith.constant dense<0.000000e+00> : vector<8xf32>
    %422 = vector.multi_reduction <add>, %421, %cst_171 [1] : vector<8x8xf32> to vector<8xf32>
    %423 = vector.shape_cast %422 : vector<8xf32> to vector<8x1xf32>
    %424 = vector.broadcast %423 : vector<8x1xf32> to vector<8x8xf32>
    %425 = arith.divf %421, %424 : vector<8x8xf32>
    %426 = arith.truncf %425 : vector<8x8xf32> to vector<8x8xbf16>
    %cst_172 = arith.constant dense<0.000000e+00> : vector<8x8xf32>
    %427 = tpu.matmul %426, %412, %cst_172 {dimension_numbers = #tpu.dot_dimension_numbers<[1], [0], [0], [1], [0, 0, 1, 1], [], []>} : vector<8x8xbf16>, vector<8x8xbf16>, vector<8x8xf32> -> vector<8x8xf32>
    %428 = vector.extract_strided_slice %12 {offsets = [8, 8], sizes = [8, 8], strides = [1, 1]} : vector<16x96xbf16> to vector<8x8xbf16>
    %429 = vector.extract_strided_slice %12 {offsets = [8, 40], sizes = [8, 8], strides = [1, 1]} : vector<16x96xbf16> to vector<8x8xbf16>
    %430 = vector.extract_strided_slice %12 {offsets = [8, 72], sizes = [8, 8], strides = [1, 1]} : vector<16x96xbf16> to vector<8x8xbf16>
    %cst_173 = arith.constant dense<0.000000e+00> : vector<8x8xf32>
    %431 = tpu.matmul %428, %429, %cst_173 {dimension_numbers = #tpu.dot_dimension_numbers<[1], [1], [0], [0], [0, 0, 1, 0], [], []>} : vector<8x8xbf16>, vector<8x8xbf16>, vector<8x8xf32> -> vector<8x8xf32>
    %cst_174 = arith.constant 0.353553385 : f32
    %432 = vector.broadcast %cst_174 : f32 to vector<8x8xf32>
    %433 = arith.mulf %431, %432 : vector<8x8xf32>
    %434 = arith.addf %433, %409 : vector<8x8xf32>
    %cst_175 = arith.constant dense<0xFF800000> : vector<8xf32>
    %435 = vector.multi_reduction <maximumf>, %434, %cst_175 [1] : vector<8x8xf32> to vector<8xf32>
    %436 = vector.shape_cast %435 : vector<8xf32> to vector<8x1xf32>
    %437 = vector.broadcast %436 : vector<8x1xf32> to vector<8x8xf32>
    %438 = arith.subf %434, %437 : vector<8x8xf32>
    %439 = math.exp %438 : vector<8x8xf32>
    %cst_176 = arith.constant dense<0.000000e+00> : vector<8xf32>
    %440 = vector.multi_reduction <add>, %439, %cst_176 [1] : vector<8x8xf32> to vector<8xf32>
    %441 = vector.shape_cast %440 : vector<8xf32> to vector<8x1xf32>
    %442 = vector.broadcast %441 : vector<8x1xf32> to vector<8x8xf32>
    %443 = arith.divf %439, %442 : vector<8x8xf32>
    %444 = arith.truncf %443 : vector<8x8xf32> to vector<8x8xbf16>
    %cst_177 = arith.constant dense<0.000000e+00> : vector<8x8xf32>
    %445 = tpu.matmul %444, %430, %cst_177 {dimension_numbers = #tpu.dot_dimension_numbers<[1], [0], [0], [1], [0, 0, 1, 1], [], []>} : vector<8x8xbf16>, vector<8x8xbf16>, vector<8x8xf32> -> vector<8x8xf32>
    %446 = vector.extract_strided_slice %12 {offsets = [8, 16], sizes = [8, 8], strides = [1, 1]} : vector<16x96xbf16> to vector<8x8xbf16>
    %447 = vector.extract_strided_slice %12 {offsets = [8, 48], sizes = [8, 8], strides = [1, 1]} : vector<16x96xbf16> to vector<8x8xbf16>
    %448 = vector.extract_strided_slice %12 {offsets = [8, 80], sizes = [8, 8], strides = [1, 1]} : vector<16x96xbf16> to vector<8x8xbf16>
    %cst_178 = arith.constant dense<0.000000e+00> : vector<8x8xf32>
    %449 = tpu.matmul %446, %447, %cst_178 {dimension_numbers = #tpu.dot_dimension_numbers<[1], [1], [0], [0], [0, 0, 1, 0], [], []>} : vector<8x8xbf16>, vector<8x8xbf16>, vector<8x8xf32> -> vector<8x8xf32>
    %cst_179 = arith.constant 0.353553385 : f32
    %450 = vector.broadcast %cst_179 : f32 to vector<8x8xf32>
    %451 = arith.mulf %449, %450 : vector<8x8xf32>
    %452 = arith.addf %451, %409 : vector<8x8xf32>
    %cst_180 = arith.constant dense<0xFF800000> : vector<8xf32>
    %453 = vector.multi_reduction <maximumf>, %452, %cst_180 [1] : vector<8x8xf32> to vector<8xf32>
    %454 = vector.shape_cast %453 : vector<8xf32> to vector<8x1xf32>
    %455 = vector.broadcast %454 : vector<8x1xf32> to vector<8x8xf32>
    %456 = arith.subf %452, %455 : vector<8x8xf32>
    %457 = math.exp %456 : vector<8x8xf32>
    %cst_181 = arith.constant dense<0.000000e+00> : vector<8xf32>
    %458 = vector.multi_reduction <add>, %457, %cst_181 [1] : vector<8x8xf32> to vector<8xf32>
    %459 = vector.shape_cast %458 : vector<8xf32> to vector<8x1xf32>
    %460 = vector.broadcast %459 : vector<8x1xf32> to vector<8x8xf32>
    %461 = arith.divf %457, %460 : vector<8x8xf32>
    %462 = arith.truncf %461 : vector<8x8xf32> to vector<8x8xbf16>
    %cst_182 = arith.constant dense<0.000000e+00> : vector<8x8xf32>
    %463 = tpu.matmul %462, %448, %cst_182 {dimension_numbers = #tpu.dot_dimension_numbers<[1], [0], [0], [1], [0, 0, 1, 1], [], []>} : vector<8x8xbf16>, vector<8x8xbf16>, vector<8x8xf32> -> vector<8x8xf32>
    %464 = vector.extract_strided_slice %12 {offsets = [8, 24], sizes = [8, 8], strides = [1, 1]} : vector<16x96xbf16> to vector<8x8xbf16>
    %465 = vector.extract_strided_slice %12 {offsets = [8, 56], sizes = [8, 8], strides = [1, 1]} : vector<16x96xbf16> to vector<8x8xbf16>
    %466 = vector.extract_strided_slice %12 {offsets = [8, 88], sizes = [8, 8], strides = [1, 1]} : vector<16x96xbf16> to vector<8x8xbf16>
    %cst_183 = arith.constant dense<0.000000e+00> : vector<8x8xf32>
    %467 = tpu.matmul %464, %465, %cst_183 {dimension_numbers = #tpu.dot_dimension_numbers<[1], [1], [0], [0], [0, 0, 1, 0], [], []>} : vector<8x8xbf16>, vector<8x8xbf16>, vector<8x8xf32> -> vector<8x8xf32>
    %cst_184 = arith.constant 0.353553385 : f32
    %468 = vector.broadcast %cst_184 : f32 to vector<8x8xf32>
    %469 = arith.mulf %467, %468 : vector<8x8xf32>
    %470 = arith.addf %469, %409 : vector<8x8xf32>
    %cst_185 = arith.constant dense<0xFF800000> : vector<8xf32>
    %471 = vector.multi_reduction <maximumf>, %470, %cst_185 [1] : vector<8x8xf32> to vector<8xf32>
    %472 = vector.shape_cast %471 : vector<8xf32> to vector<8x1xf32>
    %473 = vector.broadcast %472 : vector<8x1xf32> to vector<8x8xf32>
    %474 = arith.subf %470, %473 : vector<8x8xf32>
    %475 = math.exp %474 : vector<8x8xf32>
    %cst_186 = arith.constant dense<0.000000e+00> : vector<8xf32>
    %476 = vector.multi_reduction <add>, %475, %cst_186 [1] : vector<8x8xf32> to vector<8xf32>
    %477 = vector.shape_cast %476 : vector<8xf32> to vector<8x1xf32>
    %478 = vector.broadcast %477 : vector<8x1xf32> to vector<8x8xf32>
    %479 = arith.divf %475, %478 : vector<8x8xf32>
    %480 = arith.truncf %479 : vector<8x8xf32> to vector<8x8xbf16>
    %cst_187 = arith.constant dense<0.000000e+00> : vector<8x8xf32>
    %481 = tpu.matmul %480, %466, %cst_187 {dimension_numbers = #tpu.dot_dimension_numbers<[1], [0], [0], [1], [0, 0, 1, 1], [], []>} : vector<8x8xbf16>, vector<8x8xbf16>, vector<8x8xf32> -> vector<8x8xf32>
    %482 = tpu.concatenate %427, %445, %463, %481 in 1 : vector<8x8xf32>, vector<8x8xf32>, vector<8x8xf32>, vector<8x8xf32> -> vector<8x32xf32>
    %483 = tpu.concatenate %248, %482 in 0 : vector<8x32xf32>, vector<8x32xf32> -> vector<16x32xf32>
    %484 = arith.truncf %483 : vector<16x32xf32> to vector<16x32xbf16>
    %c0_188 = arith.constant 0 : index
    %c0_189 = arith.constant 0 : index
    %c0_190 = arith.constant 0 : index
    %485 = vector.load %arg10[%c0_188, %c0_189, %c0_190] : memref<1x32x32xbf16, #tpu.memory_space<vmem>>, vector<1x32x32xbf16>
    %486 = vector.shape_cast %485 : vector<1x32x32xbf16> to vector<32x32xbf16>
    %cst_191 = arith.constant dense<0.000000e+00> : vector<16x32xf32>
    %487 = tpu.matmul %484, %486, %cst_191 {dimension_numbers = #tpu.dot_dimension_numbers<[1], [0], [0], [1], [0, 0, 1, 1], [], []>} : vector<16x32xbf16>, vector<32x32xbf16>, vector<16x32xf32> -> vector<16x32xf32>
    %c0_192 = arith.constant 0 : index
    %c0_193 = arith.constant 0 : index
    %c0_194 = arith.constant 0 : index
    %488 = vector.load %arg11[%c0_192, %c0_193, %c0_194] : memref<1x1x32xf32, #tpu.memory_space<vmem>>, vector<1x1x32xf32>
    %489 = vector.shape_cast %488 : vector<1x1x32xf32> to vector<1x32xf32>
    %490 = vector.broadcast %489 : vector<1x32xf32> to vector<16x32xf32>
    %491 = arith.addf %487, %490 : vector<16x32xf32>
    %492 = arith.addf %491, %3 : vector<16x32xf32>
    %c0_195 = arith.constant 0 : index
    %c0_196 = arith.constant 0 : index
    %c0_197 = arith.constant 0 : index
    %493 = vector.load %arg12[%c0_195, %c0_196, %c0_197] : memref<1x1x32xf32, #tpu.memory_space<vmem>>, vector<1x1x32xf32>
    %494 = vector.shape_cast %493 : vector<1x1x32xf32> to vector<1x32xf32>
    %c0_198 = arith.constant 0 : index
    %c0_199 = arith.constant 0 : index
    %c0_200 = arith.constant 0 : index
    %495 = vector.load %arg13[%c0_198, %c0_199, %c0_200] : memref<1x1x32xf32, #tpu.memory_space<vmem>>, vector<1x1x32xf32>
    %496 = vector.shape_cast %495 : vector<1x1x32xf32> to vector<1x32xf32>
    %cst_201 = arith.constant dense<0.000000e+00> : vector<16xf32>
    %497 = vector.multi_reduction <add>, %492, %cst_201 [1] : vector<16x32xf32> to vector<16xf32>
    %498 = vector.shape_cast %497 : vector<16xf32> to vector<16x1xf32>
    %cst_202 = arith.constant 3.200000e+01 : f32
    %499 = vector.broadcast %cst_202 : f32 to vector<16x1xf32>
    %500 = arith.divf %498, %499 : vector<16x1xf32>
    %501 = vector.broadcast %500 : vector<16x1xf32> to vector<16x32xf32>
    %502 = arith.subf %492, %501 : vector<16x32xf32>
    %503 = arith.mulf %502, %502 : vector<16x32xf32>
    %cst_203 = arith.constant dense<0.000000e+00> : vector<16xf32>
    %504 = vector.multi_reduction <add>, %503, %cst_203 [1] : vector<16x32xf32> to vector<16xf32>
    %505 = vector.shape_cast %504 : vector<16xf32> to vector<16x1xf32>
    %cst_204 = arith.constant 3.200000e+01 : f32
    %506 = vector.broadcast %cst_204 : f32 to vector<16x1xf32>
    %507 = arith.divf %505, %506 : vector<16x1xf32>
    %508 = vector.broadcast %500 : vector<16x1xf32> to vector<16x32xf32>
    %509 = arith.subf %492, %508 : vector<16x32xf32>
    %cst_205 = arith.constant 9.99999996E-13 : f32
    %510 = vector.broadcast %cst_205 : f32 to vector<16x1xf32>
    %511 = arith.addf %507, %510 : vector<16x1xf32>
    %512 = math.rsqrt %511 : vector<16x1xf32>
    %513 = vector.broadcast %512 : vector<16x1xf32> to vector<16x32xf32>
    %514 = arith.mulf %509, %513 : vector<16x32xf32>
    %515 = vector.broadcast %494 : vector<1x32xf32> to vector<16x32xf32>
    %516 = arith.mulf %514, %515 : vector<16x32xf32>
    %517 = vector.broadcast %496 : vector<1x32xf32> to vector<16x32xf32>
    %518 = arith.addf %516, %517 : vector<16x32xf32>
    %519 = arith.truncf %518 : vector<16x32xf32> to vector<16x32xbf16>
    %c0_206 = arith.constant 0 : index
    %c0_207 = arith.constant 0 : index
    %c0_208 = arith.constant 0 : index
    %520 = vector.load %arg14[%c0_206, %c0_207, %c0_208] : memref<1x32x64xbf16, #tpu.memory_space<vmem>>, vector<1x32x64xbf16>
    %521 = vector.shape_cast %520 : vector<1x32x64xbf16> to vector<32x64xbf16>
    %cst_209 = arith.constant dense<0.000000e+00> : vector<16x64xf32>
    %522 = tpu.matmul %519, %521, %cst_209 {dimension_numbers = #tpu.dot_dimension_numbers<[1], [0], [0], [1], [0, 0, 1, 1], [], []>} : vector<16x32xbf16>, vector<32x64xbf16>, vector<16x64xf32> -> vector<16x64xf32>
    %c0_210 = arith.constant 0 : index
    %c0_211 = arith.constant 0 : index
    %c0_212 = arith.constant 0 : index
    %523 = vector.load %arg15[%c0_210, %c0_211, %c0_212] : memref<1x1x64xf32, #tpu.memory_space<vmem>>, vector<1x1x64xf32>
    %524 = vector.shape_cast %523 : vector<1x1x64xf32> to vector<1x64xf32>
    %525 = vector.broadcast %524 : vector<1x64xf32> to vector<16x64xf32>
    %526 = arith.addf %522, %525 : vector<16x64xf32>
    %cst_213 = arith.constant 5.000000e-01 : f32
    %527 = vector.broadcast %cst_213 : f32 to vector<16x64xf32>
    %528 = arith.mulf %527, %526 : vector<16x64xf32>
    %cst_214 = arith.constant 0.707106769 : f32
    %529 = vector.broadcast %cst_214 : f32 to vector<16x64xf32>
    %530 = arith.mulf %526, %529 : vector<16x64xf32>
    %531 = math.erf %530 : vector<16x64xf32>
    %cst_215 = arith.constant 1.000000e+00 : f32
    %532 = vector.broadcast %cst_215 : f32 to vector<16x64xf32>
    %533 = arith.addf %532, %531 : vector<16x64xf32>
    %534 = arith.mulf %528, %533 : vector<16x64xf32>
    %535 = arith.truncf %534 : vector<16x64xf32> to vector<16x64xbf16>
    %c0_216 = arith.constant 0 : index
    %c0_217 = arith.constant 0 : index
    %c0_218 = arith.constant 0 : index
    %536 = vector.load %arg16[%c0_216, %c0_217, %c0_218] : memref<1x64x32xbf16, #tpu.memory_space<vmem>>, vector<1x64x32xbf16>
    %537 = vector.shape_cast %536 : vector<1x64x32xbf16> to vector<64x32xbf16>
    %cst_219 = arith.constant dense<0.000000e+00> : vector<16x32xf32>
    %538 = tpu.matmul %535, %537, %cst_219 {dimension_numbers = #tpu.dot_dimension_numbers<[1], [0], [0], [1], [0, 0, 1, 1], [], []>} : vector<16x64xbf16>, vector<64x32xbf16>, vector<16x32xf32> -> vector<16x32xf32>
    %c0_220 = arith.constant 0 : index
    %c0_221 = arith.constant 0 : index
    %c0_222 = arith.constant 0 : index
    %539 = vector.load %arg17[%c0_220, %c0_221, %c0_222] : memref<1x1x32xf32, #tpu.memory_space<vmem>>, vector<1x1x32xf32>
    %540 = vector.shape_cast %539 : vector<1x1x32xf32> to vector<1x32xf32>
    %541 = vector.broadcast %540 : vector<1x32xf32> to vector<16x32xf32>
    %542 = arith.addf %538, %541 : vector<16x32xf32>
    %543 = arith.addf %542, %518 : vector<16x32xf32>
    %c0_223 = arith.constant 0 : index
    %c0_224 = arith.constant 0 : index
    %c0_225 = arith.constant 0 : index
    %544 = vector.load %arg18[%c0_223, %c0_224, %c0_225] : memref<1x1x32xf32, #tpu.memory_space<vmem>>, vector<1x1x32xf32>
    %545 = vector.shape_cast %544 : vector<1x1x32xf32> to vector<1x32xf32>
    %c0_226 = arith.constant 0 : index
    %c0_227 = arith.constant 0 : index
    %c0_228 = arith.constant 0 : index
    %546 = vector.load %arg19[%c0_226, %c0_227, %c0_228] : memref<1x1x32xf32, #tpu.memory_space<vmem>>, vector<1x1x32xf32>
    %547 = vector.shape_cast %546 : vector<1x1x32xf32> to vector<1x32xf32>
    %cst_229 = arith.constant dense<0.000000e+00> : vector<16xf32>
    %548 = vector.multi_reduction <add>, %543, %cst_229 [1] : vector<16x32xf32> to vector<16xf32>
    %549 = vector.shape_cast %548 : vector<16xf32> to vector<16x1xf32>
    %cst_230 = arith.constant 3.200000e+01 : f32
    %550 = vector.broadcast %cst_230 : f32 to vector<16x1xf32>
    %551 = arith.divf %549, %550 : vector<16x1xf32>
    %552 = vector.broadcast %551 : vector<16x1xf32> to vector<16x32xf32>
    %553 = arith.subf %543, %552 : vector<16x32xf32>
    %554 = arith.mulf %553, %553 : vector<16x32xf32>
    %cst_231 = arith.constant dense<0.000000e+00> : vector<16xf32>
    %555 = vector.multi_reduction <add>, %554, %cst_231 [1] : vector<16x32xf32> to vector<16xf32>
    %556 = vector.shape_cast %555 : vector<16xf32> to vector<16x1xf32>
    %cst_232 = arith.constant 3.200000e+01 : f32
    %557 = vector.broadcast %cst_232 : f32 to vector<16x1xf32>
    %558 = arith.divf %556, %557 : vector<16x1xf32>
    %559 = vector.broadcast %551 : vector<16x1xf32> to vector<16x32xf32>
    %560 = arith.subf %543, %559 : vector<16x32xf32>
    %cst_233 = arith.constant 9.99999996E-13 : f32
    %561 = vector.broadcast %cst_233 : f32 to vector<16x1xf32>
    %562 = arith.addf %558, %561 : vector<16x1xf32>
    %563 = math.rsqrt %562 : vector<16x1xf32>
    %564 = vector.broadcast %563 : vector<16x1xf32> to vector<16x32xf32>
    %565 = arith.mulf %560, %564 : vector<16x32xf32>
    %566 = vector.broadcast %545 : vector<1x32xf32> to vector<16x32xf32>
    %567 = arith.mulf %565, %566 : vector<16x32xf32>
    %568 = vector.broadcast %547 : vector<1x32xf32> to vector<16x32xf32>
    %569 = arith.addf %567, %568 : vector<16x32xf32>
    %c0_234 = arith.constant 0 : index
    %c0_235 = arith.constant 0 : index
    %570 = vector.load %arg21[%c0_234, %c0_235] : memref<16x32xf32, #tpu.memory_space<vmem>>, vector<16x32xf32>
    tpu.vector_store %arg21[%c0_234, %c0_235], %569 {strides = array<i32>} : memref<16x32xf32, #tpu.memory_space<vmem>>, vector<16x32xf32>,
    %c0_236 = arith.constant 0 : index
    %c0_237 = arith.constant 0 : index
    %c0_238 = arith.constant 0 : index
    %571 = vector.load %arg20[%c0_236, %c0_237, %c0_238] : memref<1x16x32xf32, #tpu.memory_space<vmem>>, vector<1x16x32xf32>
    %572 = vector.shape_cast %571 : vector<1x16x32xf32> to vector<16x32xf32>
    %573 = vector.shape_cast %569 : vector<16x32xf32> to vector<1x16x32xf32>
    tpu.vector_store %arg20[%c0_236, %c0_237, %c0_238], %573 {strides = array<i32>} : memref<1x16x32xf32, #tpu.memory_space<vmem>>, vector<1x16x32xf32>,
    return
  }
  func.func @transform_0(%arg0: i32, %arg1: i32) -> i32 {
    %c0_i32 = arith.constant 0 : i32
    %c0_i32_0 = arith.constant 0 : i32
    return %c0_i32 : i32
  }
  func.func @transform_1(%arg0: i32, %arg1: i32) -> (i32, i32) {
    %c0_i32 = arith.constant 0 : i32
    %c0_i32_0 = arith.constant 0 : i32
    return %arg0, %c0_i32 : i32, i32
  }
  func.func @transform_2(%arg0: i32, %arg1: i32) -> (i32, i32, i32) {
    %c0_i32 = arith.constant 0 : i32
    %c0_i32_0 = arith.constant 0 : i32
    %c0_i32_1 = arith.constant 0 : i32
    return %arg0, %c0_i32, %c0_i32_0 : i32, i32, i32
  }
  func.func @transform_3(%arg0: i32, %arg1: i32) -> (i32, i32, i32) {
    %c0_i32 = arith.constant 0 : i32
    %c0_i32_0 = arith.constant 0 : i32
    %c0_i32_1 = arith.constant 0 : i32
    return %arg0, %c0_i32, %c0_i32_0 : i32, i32, i32
  }
  func.func @transform_4(%arg0: i32, %arg1: i32) -> (i32, i32, i32) {
    %c0_i32 = arith.constant 0 : i32
    %c0_i32_0 = arith.constant 0 : i32
    %c0_i32_1 = arith.constant 0 : i32
    return %arg0, %c0_i32, %c0_i32_0 : i32, i32, i32
  }
  func.func @transform_5(%arg0: i32, %arg1: i32) -> (i32, i32, i32) {
    %c0_i32 = arith.constant 0 : i32
    %c0_i32_0 = arith.constant 0 : i32
    %c0_i32_1 = arith.constant 0 : i32
    return %arg0, %c0_i32, %c0_i32_0 : i32, i32, i32
  }
  func.func @transform_6(%arg0: i32, %arg1: i32) -> (i32, i32, i32) {
    %c0_i32 = arith.constant 0 : i32
    %c0_i32_0 = arith.constant 0 : i32
    %c0_i32_1 = arith.constant 0 : i32
    return %arg1, %c0_i32, %c0_i32_0 : i32, i32, i32
  }
  func.func @transform_7(%arg0: i32, %arg1: i32) -> (i32, i32, i32) {
    %c0_i32 = arith.constant 0 : i32
    %c0_i32_0 = arith.constant 0 : i32
    %c0_i32_1 = arith.constant 0 : i32
    return %arg1, %c0_i32, %c0_i32_0 : i32, i32, i32
  }
  func.func @transform_8(%arg0: i32, %arg1: i32) -> (i32, i32, i32) {
    %c0_i32 = arith.constant 0 : i32
    %c0_i32_0 = arith.constant 0 : i32
    %c0_i32_1 = arith.constant 0 : i32
    return %arg1, %c0_i32, %c0_i32_0 : i32, i32, i32
  }
  func.func @transform_9(%arg0: i32, %arg1: i32) -> (i32, i32, i32) {
    %c0_i32 = arith.constant 0 : i32
    %c0_i32_0 = arith.constant 0 : i32
    %c0_i32_1 = arith.constant 0 : i32
    return %arg1, %c0_i32, %c0_i32_0 : i32, i32, i32
  }
  func.func @transform_10(%arg0: i32, %arg1: i32) -> (i32, i32, i32) {
    %c0_i32 = arith.constant 0 : i32
    %c0_i32_0 = arith.constant 0 : i32
    %c0_i32_1 = arith.constant 0 : i32
    return %arg1, %c0_i32, %c0_i32_0 : i32, i32, i32
  }
  func.func @transform_11(%arg0: i32, %arg1: i32) -> (i32, i32, i32) {
    %c0_i32 = arith.constant 0 : i32
    %c0_i32_0 = arith.constant 0 : i32
    %c0_i32_1 = arith.constant 0 : i32
    return %arg1, %c0_i32, %c0_i32_0 : i32, i32, i32
  }
  func.func @transform_12(%arg0: i32, %arg1: i32) -> (i32, i32, i32) {
    %c0_i32 = arith.constant 0 : i32
    %c0_i32_0 = arith.constant 0 : i32
    %c0_i32_1 = arith.constant 0 : i32
    return %arg1, %c0_i32, %c0_i32_0 : i32, i32, i32
  }
  func.func @transform_13(%arg0: i32, %arg1: i32) -> (i32, i32, i32) {
    %c0_i32 = arith.constant 0 : i32
    %c0_i32_0 = arith.constant 0 : i32
    %c0_i32_1 = arith.constant 0 : i32
    return %arg1, %c0_i32, %c0_i32_0 : i32, i32, i32
  }
  func.func @transform_14(%arg0: i32, %arg1: i32) -> (i32, i32, i32) {
    %c0_i32 = arith.constant 0 : i32
    %c0_i32_0 = arith.constant 0 : i32
    %c0_i32_1 = arith.constant 0 : i32
    return %arg1, %c0_i32, %c0_i32_0 : i32, i32, i32
  }
  func.func @transform_15(%arg0: i32, %arg1: i32) -> (i32, i32, i32) {
    %c0_i32 = arith.constant 0 : i32
    %c0_i32_0 = arith.constant 0 : i32
    %c0_i32_1 = arith.constant 0 : i32
    return %arg1, %c0_i32, %c0_i32_0 : i32, i32, i32
  }
  func.func @transform_16(%arg0: i32, %arg1: i32) -> (i32, i32, i32) {
    %c0_i32 = arith.constant 0 : i32
    %c0_i32_0 = arith.constant 0 : i32
    %c0_i32_1 = arith.constant 0 : i32
    return %arg1, %c0_i32, %c0_i32_0 : i32, i32, i32
  }
  func.func @transform_17(%arg0: i32, %arg1: i32) -> (i32, i32, i32) {
    %c0_i32 = arith.constant 0 : i32
    %c0_i32_0 = arith.constant 0 : i32
    %c0_i32_1 = arith.constant 0 : i32
    return %arg1, %c0_i32, %c0_i32_0 : i32, i32, i32
  }
  func.func @transform_18(%arg0: i32, %arg1: i32) -> (i32, i32, i32) {
    %c0_i32 = arith.constant 0 : i32
    %c0_i32_0 = arith.constant 0 : i32
    return %arg1, %arg0, %c0_i32 : i32, i32, i32
  }
}

</mosaic_0001>

<bundles_post_ra>
// kernel: welkir_encoder_forward.1
= control target key start
LH: loop header
LB: loop body
LE: loop exit
PB: predicated region body
PF: predicated region fallthrough
CT: control target
= control target key end

     0   :  { %s4559_s0 = inlined_call_operand.vmem [shape: f32[36], index: 0, kind: input, shape index: {}]   ;;  %s4560_s1 = inlined_call_operand.hbm [shape: f32[16,32], index: 1, kind: input, shape index: {}]   ;;  %s4561_s2 = inlined_call_operand.vmem [shape: f32[2,1,8], index: 2, kind: input, shape index: {}]   ;;  %s4562_s3 = inlined_call_operand.hbm [shape: s32[2,8,8], index: 3, kind: input, shape index: {}]   ;;  %s4563_s4 = inlined_call_operand.hbm [shape: s32[2,8,8], index: 4, kind: input, shape index: {}]   ;;  %s4564_s5 = inlined_call_operand.hbm [shape: s32[2,8,8], index: 5, kind: input, shape index: {}]   ;;  %s4565_s6 = inlined_call_operand.hbm [shape: bf16[2,32,96], index: 6, kind: input, shape index: {}]   ;;  %s4566_s7 = inlined_call_operand.vmem [shape: f32[2,1,96], index: 7, kind: input, shape index: {}]   ;;  %s4567_s8 = inlined_call_operand.hbm [shape: bf16[2,32,32], index: 8, kind: input, shape index: {}]   ;;  %s4568_s9 = inlined_call_operand.vmem [shape: f32[2,1,32], index: 9, kind: input, shape index: {}]   ;;  %s4569_s10 = inlined_call_operand.vmem [shape: f32[2,1,32], index: 10, kind: input, shape index: {}, may-alias: {10,16}]   ;;  %s4570_s11 = inlined_call_operand.vmem [shape: f32[2,1,32], index: 11, kind: input, shape index: {}, may-alias: {11,17}]   ;;  %s4571_s12 = inlined_call_operand.hbm [shape: bf16[2,32,64], index: 12, kind: input, shape index: {}]   ;;  %s4572_s13 = inlined_call_operand.hbm [shape: f32[2,1,64], index: 13, kind: input, shape index: {}]   ;;  %s4573_s14 = inlined_call_operand.vmem [shape: bf16[2,64,32], index: 14, kind: input, shape index: {}]   ;;  %s4574_s15 = inlined_call_operand.hbm [shape: f32[2,1,32], index: 15, kind: input, shape index: {}]   ;;  %s4575_s16 = inlined_call_operand.vmem [shape: f32[2,1,32], index: 16, kind: input, shape index: {}, may-alias: {10,16}]   ;;  %s4576_s17 = inlined_call_operand.vmem [shape: f32[2,1,32], index: 17, kind: input, shape index: {}, may-alias: {11,17}]   ;;  %s4577_s18 = inlined_call_operand.vmem [shape: f32[2,16,32], index: 18, kind: output, shape index: {}]  }
   0x1   :  { %4605 = sst [smem:[#allocation27_spill]] %s4559_s0 }
   0x2   :  { %4606 = sst [smem:[#allocation28_spill]] %s4560_s1 }
   0x3   :  { %4607 = sst [smem:[#allocation29_spill]] %s4561_s2 }
   0x4   :  { %4608 = sst [smem:[#allocation30_spill]] %s4562_s3 }
   0x5   :  { %4609 = sst [smem:[#allocation31_spill]] %s4563_s4 }
   0x6   :  { %4610 = sst [smem:[#allocation32_spill]] %s4564_s5 }
   0x7   :  { %4611 = sst [smem:[#allocation33_spill]] %s4565_s6 }
   0x8   :  { %4612 = sst [smem:[#allocation34_spill]] %s4566_s7 }
   0x9   :  { %4613 = sst [smem:[#allocation35_spill]] %s4567_s8 }
   0xa   :  { %4614 = sst [smem:[#allocation36_spill]] %s4568_s9 }
   0xb   :  { %4615 = sst [smem:[#allocation37_spill]] %s4569_s10 }
   0xc   :  { %4616 = sst [smem:[#allocation38_spill]] %s4570_s11 }
   0xd   :  { %4617 = sst [smem:[#allocation39_spill]] %s4573_s14 }
   0xe   :  { %4618 = sst [smem:[#allocation40_spill]] %s4575_s16 }
   0xf   :  { %4619 = sst [smem:[#allocation41_spill]] %s4576_s17 }
  0x10   :  { %4620 = sst [smem:[#allocation42_spill]] %s4577_s18 }
  0x11   :  { %23 = vsyncpa [#allocation5], 0 }
  0x12   :  { %24 = vsyncpa [#allocation4], 0 }
  0x13   :  { %25 = vsyncpa [#allocation8], 0 }
  0x14   :  { %26 = vsyncpa [#allocation11], 0  ;;  %s3734_s27 = smov 0   ;;  %s3736_s28 = smov 0  }
  0x15   :  { %s3738_s29 = smov 0   ;;  %s3740_s30 = smov 0  }
  0x16   :  { %s3742_s0 = smov 0   ;;  %s3744_s19 = smov 0  }
  0x17 LB: > { %4621 = sst [smem:[#allocation22_spill]] %s3595_s29  ;;  %s4580_s1 = sadd.s32 4294967295, %s3607_s19   ;;  %s3607_s19 = sphi %s3744_s19, %s32_s19   ;;  %s3603_s0 = sphi %s3742_s0, %s4690_s0   ;;  %s3599_s30 = sphi %s3740_s30, %s4689_s30   ;;  %s3595_s29 = sphi %s3738_s29, %s4685_s29   ;;  %s3591_s28 = sphi %s3736_s28, %s4688_s28   ;;  %s3587_s27 = sphi %s3734_s27, %s4687_s27  }
  0x18   : > { %4622 = sst [smem:[#allocation23_spill]] %s3599_s30  ;;  %p215_p0 = scmp.ne.s32.totalorder %s3591_s28, %s3587_s27 }
  0x19   : > { %p3766_p1 = scmp.eq.s32.totalorder %s4580_s1, 0  ;;  %p2788_p2 = scmp.ge.s32.totalorder %s3607_s19, 1 }
  0x1a   : > { %p540_p3 = scmp.lt.s32.totalorder %s3607_s19, 3  ;;  %s3609_s2 = smov [#allocation6]  }
  0x1b   : > { %s4623_s20 = scalar_select %p3766_p1, 1, 0 }
  0x1c   : > { %p3774_p4 = por %p3766_p1, %p215_p0  ;;  %p3778_p5 = pnand %p2788_p2, %p540_p3 }
  0x1d   : > { %s566_s23 = sshll.u32 %s3609_s2, 4  ;;  %s41_s25 = sadd.s32 1, %s3603_s0  ;;  %s567_s23 = int_to_ptr.vmem [resolvable:$true] %s566_s23 }
  0x1e   : > { %s4624_s21 = scalar_select %p3774_p4, 1, 0 }
  0x1f   : > { %s4626_s22 = scalar_select %p3778_p5, 1, 0 }
  0x20   : > { %4625 = sst [smem:[#allocation24_spill]] %s4624_s21  ;;  %p3077_p6 = pneg %p3778_p5 }
  0x21   : > { %s4628_s1 = sld [smem:[#allocation28_spill]] }
  0x22   : > { %p3786_p7 = pnand %p3077_p6, %p3766_p1 }
  0x24   : > { %s4627_s24 = scalar_select %p3786_p7, 1, 0 }
  0x25   : > { %p3799_p9 = pneg %p3786_p7 }
  0x27   : > { %s3264_s18 = scalar_lea.hbm %s4628_s1, 256 }
  0x28   : > { %p3265_p8 = scmp.ne.s32.totalorder %s4628_s1, %s3264_s18  ;;  %p3271_p12 = scmp.lt.u32.totalorder %s3264_s18, %s4628_s1 }
  0x29   : > { %s4629_s2 = scalar_select %p3799_p9, 1, 0 }
  0x2a   : > { %p3267_p10 = pnand %p3799_p9, %p3265_p8 }
  0x2c   : > { %p3268_p11 = pneg %p3267_p10 }
  0x2e   : > { %p3273_p13 = pnand %p3271_p12, %p3268_p11 }
  0x30   : > { %3276 = shalt.err (!%p3273_p13)
}
  0x31   : > { %s3277_s26 = scalar_lea.vmem %s567_s23, 256  ;;  %p3285_p6 = scmp.lt.s32.totalorder %s567_s23, %s567_s23 }
  0x32   : > { %p3278_p0 = scmp.ne.s32.totalorder %s567_s23, %s3277_s26  ;;  %p3286_p4 = scmp.lt.s32.totalorder %s3277_s26, %s3277_s26 }
  0x34   : > { %p3280_p2 = pnand %p3278_p0, %p3799_p9  ;;  %p3287_p1 = por %p3286_p4, %p3285_p6 }
  0x36   : > { %p3281_p3 = pneg %p3280_p2 }
  0x38   : > { %p3288_p5 = pnand %p3287_p1, %p3281_p3 }
  0x3a   : > { %3291 = shalt.err (!%p3288_p5)
}
  0x3b   : > { %s4585_s14 = smov 128   ;;  %s4587_s11 = smov 8  }
  0x3c   : > { %3083 = dma.hbm_to_vmem [thread:$0]  (!%p3786_p7), %s4628_s1, 256, %s567_s23, [#allocation4], %s4585_s14, %s4585_s14, %s4587_s11  }
  0x3d   : > { %p42_p1 = scmp.ge.s32.totalorder %s41_s25, 2  ;;  %s202_s18 = sadd.s32 1, %s3595_s29 }
  0x3e   : > { %p209_p4 = scmp.ne.s32.totalorder %s3595_s29, %s3591_s28  ;;  %p210_p5 = scmp.eq.s32.totalorder %s3607_s19, 0 }
  0x3f   : > { %s4692_s25 = smov (%p42_p1, %s41_s25), 0  ;;  %p3114_p10 = scmp.lt.s32.totalorder %s3607_s19, 2 }
  0x40   : > { %4630 = sst [smem:[#allocation25_spill]] %s4692_s25  ;;  %p211_p8 = por %p210_p5, %p209_p4 }
  0x41   : > { %s199_s27 = ssub.s32 %s3603_s0, %s4692_s25  ;;  %s636_s26 = sand.u32 1, %s3607_s19  }
  0x42   : > { %p200_p11 = scmp.eq.s32.totalorder %s199_s27, 0  ;;  %s3829_s10 = sand.u32 1, %s3595_s29  }
  0x43   : > { %s3832_s9 = sshll.u32 %s3603_s0, 8  ;;  %s3838_s23 = sshll.u32 %s3829_s10, 4 }
  0x44   : > { %s3835_s16 = scalar_select %p200_p11, %s3595_s29, %s202_s18  }
  0x45   : > { %s4632_s6 = sld [smem:[#allocation33_spill]]  ;;  %p3846_p12 = pnand %p3114_p10, %p211_p8 }
  0x46   : > { %4631 = sst [smem:[#allocation26_spill]] %s3835_s16  ;;  %s640_s1 = scalar_lea.vmem [#allocation12], %s3838_s23 }
  0x47   : > { %s4633_s27 = scalar_select %p3846_p12, 1, 0 }
  0x48   : > { %s647_s18 = sshll.u32 %s640_s1, 4  ;;  %s3853_s25 = scalar_lea.sflag [#allocation4], %s636_s26  ;;  %s3851_s18 = int_to_ptr.vmem [resolvable:$true] %s647_s18 }
  0x49   : > { %p3859_p0 = pneg %p3846_p12 }
  0x4b   : > { %s3844_s11 = scalar_lea.hbm %s4632_s6, %s3832_s9  ;;  %s3297_s7 = scalar_lea.hbm %s4632_s6, 512 }
  0x4c   : > { %s3292_s16 = scalar_lea.hbm %s3844_s11, 256  ;;  %p3298_p6 = scmp.lt.u32.totalorder %s3844_s11, %s4632_s6 }
  0x4d   : > { %p3293_p13 = scmp.ne.s32.totalorder %s3844_s11, %s3292_s16  ;;  %p3299_p1 = scmp.lt.u32.totalorder %s3297_s7, %s3292_s16 }
  0x4e   : > { %s4634_s14 = scalar_select %p3859_p0, 1, 0 }
  0x4f   : > { %p3295_p2 = pnand %p3859_p0, %p3293_p13  ;;  %p3300_p4 = por %p3299_p1, %p3298_p6 }
  0x50   : > { %p3301_p5 = scmp.lt.u32.totalorder %s3292_s16, %s3844_s11 }
  0x51   : > { %p3296_p3 = pneg %p3295_p2 }
  0x52   : > { %p3302_p8 = por %p3301_p5, %p3300_p4 }
  0x54   : > { %p3303_p10 = pnand %p3302_p8, %p3296_p3 }
  0x56   : > { %3306 = shalt.err (!%p3303_p10)
}
  0x57   : > { %s3307_s26 = scalar_lea.vmem %s3851_s18, 256  ;;  %s3612_s29 = smov [#allocation12]  }
  0x58   : > { %p3308_p11 = scmp.ne.s32.totalorder %s3851_s18, %s3307_s26  ;;  %s3312_s17 = sshll.u32 %s3612_s29, 4  ;;  %s3313_s17 = int_to_ptr.vmem [resolvable:$false] %s3312_s17 }
  0x59   : > { %s3314_s30 = scalar_lea.vmem %s3313_s17, 512  ;;  %p3315_p7 = scmp.lt.s32.totalorder %s3851_s18, %s3313_s17 }
  0x5a   : > { %p3310_p13 = pnand %p3308_p11, %p3859_p0  ;;  %p3316_p9 = scmp.lt.s32.totalorder %s3314_s30, %s3307_s26 }
  0x5c   : > { %p3311_p2 = pneg %p3310_p13  ;;  %p3317_p6 = por %p3316_p9, %p3315_p7 }
  0x5e   : > { %p3318_p1 = pnand %p3317_p6, %p3311_p2 }
  0x60   : > { %3321 = shalt.err (!%p3318_p1)
}
  0x61   : > { %s3613_s7 = smov 64   ;;  %s3614_s16 = smov 4  }
  0x62   : > { %3096 = dma.hbm_to_vmem [thread:$0]  (!%p3846_p12), %s3844_s11, 256, %s3851_s18, %s3853_s25, %s3613_s7, %s3613_s7, %s3614_s16  }
  0x63   : > { %s4635_s8 = sld [smem:[#allocation35_spill]]  ;;  %s667_s17 = scalar_lea.vmem [#allocation13], %s3838_s23 }
  0x64   : > { %s674_s30 = sshll.u32 %s667_s17, 4  ;;  %s3893_s30 = int_to_ptr.vmem [resolvable:$true] %s674_s30 }
  0x69   : > { %s3890_s26 = scalar_lea.hbm %s4635_s8, %s3832_s9  ;;  %s3327_s18 = scalar_lea.hbm %s4635_s8, 512 }
  0x6a   : > { %s3322_s6 = scalar_lea.hbm %s3890_s26, 256  ;;  %p3328_p4 = scmp.lt.u32.totalorder %s3890_s26, %s4635_s8 }
  0x6b   : > { %p3323_p7 = scmp.ne.s32.totalorder %s3890_s26, %s3322_s6  ;;  %p3329_p5 = scmp.lt.u32.totalorder %s3327_s18, %s3322_s6 }
  0x6c   : > { %p3331_p10 = scmp.lt.u32.totalorder %s3322_s6, %s3890_s26 }
  0x6d   : > { %p3325_p9 = pnand %p3323_p7, %p3859_p0  ;;  %p3330_p8 = por %p3329_p5, %p3328_p4 }
  0x6f   : > { %p3326_p3 = pneg %p3325_p9  ;;  %p3332_p11 = por %p3331_p10, %p3330_p8 }
  0x71   : > { %p3333_p13 = pnand %p3332_p11, %p3326_p3 }
  0x73   : > { %3336 = shalt.err (!%p3333_p13)
}
  0x74   : > { %s3337_s17 = scalar_lea.vmem %s3893_s30, 256  ;;  %s3615_s21 = smov [#allocation13]  }
  0x75   : > { %p3338_p2 = scmp.ne.s32.totalorder %s3893_s30, %s3337_s17  ;;  %s3342_s11 = sshll.u32 %s3615_s21, 4  ;;  %s3343_s11 = int_to_ptr.vmem [resolvable:$false] %s3342_s11 }
  0x76   : > { %s3344_s1 = scalar_lea.vmem %s3343_s11, 512  ;;  %p3345_p7 = scmp.lt.s32.totalorder %s3893_s30, %s3343_s11 }
  0x77   : > { %p3340_p6 = pnand %p3338_p2, %p3859_p0  ;;  %p3346_p9 = scmp.lt.s32.totalorder %s3344_s1, %s3337_s17 }
  0x79   : > { %p3341_p1 = pneg %p3340_p6  ;;  %p3347_p4 = por %p3346_p9, %p3345_p7 }
  0x7b   : > { %p3348_p5 = pnand %p3347_p4, %p3341_p1 }
  0x7d   : > { %3351 = shalt.err (!%p3348_p5)
}
  0x7e   : > { %3099 = dma.hbm_to_vmem [thread:$0]  (!%p3846_p12), %s3890_s26, 256, %s3893_s30, %s3853_s25, %s3613_s7, %s3613_s7, %s3614_s16  }
  0x7f   : > { %s3924_s29 = scalar_lea.hbm %s4571_s12, %s3832_s9  ;;  %s706_s17 = scalar_lea.vmem [#allocation14], %s3838_s23 }
  0x80   : > { %s713_s21 = sshll.u32 %s706_s17, 4  ;;  %s3352_s11 = scalar_lea.hbm %s3924_s29, 256  ;;  %s3927_s21 = int_to_ptr.vmem [resolvable:$true] %s713_s21 }
  0x81   : > { %p3353_p3 = scmp.ne.s32.totalorder %s3924_s29, %s3352_s11  ;;  %s3357_s30 = scalar_lea.hbm %s4571_s12, 512 }
  0x82   : > { %p3358_p11 = scmp.lt.u32.totalorder %s3924_s29, %s4571_s12  ;;  %p3359_p13 = scmp.lt.u32.totalorder %s3357_s30, %s3352_s11 }
  0x83   : > { %p3355_p8 = pnand %p3353_p3, %p3859_p0  ;;  %p3361_p6 = scmp.lt.u32.totalorder %s3352_s11, %s3924_s29 }
  0x84   : > { %p3360_p2 = por %p3359_p13, %p3358_p11 }
  0x85   : > { %p3356_p10 = pneg %p3355_p8 }
  0x86   : > { %p3362_p1 = por %p3361_p6, %p3360_p2 }
  0x88   : > { %p3363_p7 = pnand %p3362_p1, %p3356_p10 }
  0x8a   : > { %3366 = shalt.err (!%p3363_p7)
}
  0x8b   : > { %s3367_s23 = scalar_lea.vmem %s3927_s21, 256  ;;  %s3616_s18 = smov [#allocation14]  }
  0x8c   : > { %p3368_p9 = scmp.ne.s32.totalorder %s3927_s21, %s3367_s23  ;;  %s3372_s17 = sshll.u32 %s3616_s18, 4  ;;  %s3373_s17 = int_to_ptr.vmem [resolvable:$false] %s3372_s17 }
  0x8d   : > { %s3374_s1 = scalar_lea.vmem %s3373_s17, 512  ;;  %p3375_p3 = scmp.lt.s32.totalorder %s3927_s21, %s3373_s17 }
  0x8e   : > { %p3370_p4 = pnand %p3368_p9, %p3859_p0  ;;  %p3376_p8 = scmp.lt.s32.totalorder %s3374_s1, %s3367_s23 }
  0x90   : > { %p3371_p5 = pneg %p3370_p4  ;;  %p3377_p11 = por %p3376_p8, %p3375_p3 }
  0x92   : > { %p3378_p13 = pnand %p3377_p11, %p3371_p5 }
  0x94   : > { %3381 = shalt.err (!%p3378_p13)
}
  0x95   : > { %3102 = dma.hbm_to_vmem [thread:$0]  (!%p3846_p12), %s3924_s29, 256, %s3927_s21, %s3853_s25, %s3613_s7, %s3613_s7, %s3614_s16  }
  0x96   : > { %s3617_s11 = smov [#allocation7]   ;;  %s4602_s30 = sshll.u32 %s3603_s0, 4 }
  0x97   : > { %s590_s26 = sshll.u32 %s3617_s11, 4  ;;  %s4636_s3 = sld [smem:[#allocation30_spill]]  ;;  %s591_s26 = int_to_ptr.vmem [resolvable:$true] %s590_s26 }
  0x98   : > { %p4637_p2 = scmp.ne.s32.totalorder %s4629_s2, 0 }
  0x9d   : > { %s3382_s23 = scalar_lea.hbm %s4636_s3, 256 }
  0x9e   : > { %p3383_p10 = scmp.ne.s32.totalorder %s4636_s3, %s3382_s23  ;;  %p3389_p7 = scmp.lt.u32.totalorder %s3382_s23, %s4636_s3 }
  0xa0   : > { %p3385_p6 = pnand %p3383_p10, %p4637_p2 }
  0xa2   : > { %p3386_p1 = pneg %p3385_p6 }
  0xa4   : > { %p3391_p9 = pnand %p3389_p7, %p3386_p1 }
  0xa6   : > { %3394 = shalt.err (!%p3391_p9)
}
  0xa7   : > { %s3395_s7 = scalar_lea.vmem %s591_s26, 256  ;;  %p3403_p8 = scmp.lt.s32.totalorder %s591_s26, %s591_s26 }
  0xa8   : > { %p3396_p4 = scmp.ne.s32.totalorder %s591_s26, %s3395_s7  ;;  %p3404_p11 = scmp.lt.s32.totalorder %s3395_s7, %s3395_s7 }
  0xaa   : > { %p3398_p5 = pnand %p3396_p4, %p4637_p2  ;;  %p3405_p13 = por %p3404_p11, %p3403_p8 }
  0xac   : > { %p3399_p3 = pneg %p3398_p5 }
  0xae   : > { %p3406_p12 = pnand %p3405_p13, %p3399_p3 }
  0xb0   : > { %3409 = shalt.err (!%p3406_p12)
}
  0xb1   : > { %p4638_p10 = scmp.ne.s32.totalorder %s4627_s24, 0  ;;  %s4639_s16 = smov 8  }
  0xb2   : > { %s4640_s29 = smov 128   ;;  %s3981_s9 = scalar_lea.hbm %s4572_s13, %s4602_s30 }
  0xb3   : > { %3086 = dma.hbm_to_vmem [thread:$0]  (!%p4638_p10), %s4636_s3, 256, %s591_s26, [#allocation8], %s4640_s29, %s4640_s29, %s4639_s16  }
  0xb4   : > { %s726_s23 = scalar_lea.vmem [#allocation15], %s3829_s10  ;;  %s3410_s17 = scalar_lea.hbm %s3981_s9, 16 }
  0xb5   : > { %s733_s18 = sshll.u32 %s726_s23, 4  ;;  %p3411_p12 = scmp.ne.s32.totalorder %s3981_s9, %s3410_s17  ;;  %s734_s18 = int_to_ptr.vmem [resolvable:$true] %s733_s18 }
  0xb6   : > { %s3415_s7 = scalar_lea.hbm %s4572_s13, 32  ;;  %p3416_p7 = scmp.lt.u32.totalorder %s3981_s9, %s4572_s13 }
  0xb7   : > { %p3413_p6 = pnand %p3411_p12, %p3859_p0  ;;  %p3417_p9 = scmp.lt.u32.totalorder %s3415_s7, %s3410_s17 }
  0xb8   : > { %p3419_p5 = scmp.lt.u32.totalorder %s3410_s17, %s3981_s9 }
  0xb9   : > { %p3414_p1 = pneg %p3413_p6  ;;  %p3418_p4 = por %p3417_p9, %p3416_p7 }
  0xbb   : > { %p3420_p3 = por %p3419_p5, %p3418_p4 }
  0xbd   : > { %p3421_p8 = pnand %p3420_p3, %p3414_p1 }
  0xbf   : > { %3424 = shalt.err (!%p3421_p8)
}
  0xc0   : > { %s3425_s11 = scalar_lea.vmem %s734_s18, 16  ;;  %s3618_s6 = smov [#allocation15]  }
  0xc1   : > { %p3426_p11 = scmp.ne.s32.totalorder %s734_s18, %s3425_s11  ;;  %s3430_s23 = sshll.u32 %s3618_s6, 4  ;;  %s3431_s23 = int_to_ptr.vmem [resolvable:$false] %s3430_s23 }
  0xc2   : > { %s3432_s1 = scalar_lea.vmem %s3431_s23, 32  ;;  %p3433_p6 = scmp.lt.s32.totalorder %s734_s18, %s3431_s23 }
  0xc3   : > { %p3428_p13 = pnand %p3426_p11, %p3859_p0  ;;  %p3434_p10 = scmp.lt.s32.totalorder %s3432_s1, %s3425_s11 }
  0xc5   : > { %p3429_p12 = pneg %p3428_p13  ;;  %p3435_p2 = por %p3434_p10, %p3433_p6 }
  0xc7   : > { %p3436_p7 = pnand %p3435_p2, %p3429_p12 }
  0xc9   : > { %3439 = shalt.err (!%p3436_p7)
}
  0xca   : > { %p4641_p9 = scmp.ne.s32.totalorder %s4633_s27, 0  ;;  %s4642_s7 = sld [smem:[#allocation27_spill]] }
  0xcb   : > { %p4643_p4 = scmp.ne.s32.totalorder %s4629_s2, 0 }
  0xcc   : > { %3105 = dma.hbm_to_vmem [thread:$0]  (!%p4641_p9), %s3981_s9, 16, %s734_s18, %s3853_s25  }
  0xd0   : > { %s553_s8 = sshll.u32 %s4642_s7, 4  ;;  %s554_s8 = int_to_ptr.vmem [resolvable:$true] %s553_s8 }
  0xd1   : > { %s3440_s21 = scalar_lea.vmem %s554_s8, 16  ;;  %p3448_p8 = scmp.lt.s32.totalorder %s554_s8, %s554_s8 }
  0xd2   : > { %p3441_p1 = scmp.ne.s32.totalorder %s554_s8, %s3440_s21  ;;  %p3449_p10 = scmp.lt.s32.totalorder %s3440_s21, %s3440_s21 }
  0xd4   : > { %p3443_p5 = pnand %p3441_p1, %p4643_p4  ;;  %p3450_p2 = por %p3449_p10, %p3448_p8 }
  0xd6   : > { %p3444_p3 = pneg %p3443_p5 }
  0xd8   : > { %p3451_p11 = pnand %p3450_p2, %p3444_p3 }
  0xda   : > { %3454 = shalt.err (!%p3451_p11)
}
  0xdb   : > { %s3619_s11 = smov [#allocation3]   ;;  %p4644_p13 = scmp.ne.s32.totalorder %s4627_s24, 0 }
  0xdc   : > { %s3620_s9 = smov [#allocation9]   ;;  %s3621_s6 = smov [#allocation10]  }
  0xdd   : > { %3080 = dma.vmem_to_smem (!%p4644_p13), %s554_s8, 16, %s3619_s11, [#allocation5]  }
  0xde   : > { %s606_s18 = sshll.u32 %s3620_s9, 4  ;;  %s622_s23 = sshll.u32 %s3621_s6, 4  ;;  %s607_s18 = int_to_ptr.vmem [resolvable:$true] %s606_s18  ;;  %s4009_s23 = int_to_ptr.vmem [resolvable:$true] %s622_s23 }
  0xdf   : > { %s4645_s4 = sld [smem:[#allocation31_spill]] }
  0xe5   : > { %s3455_s26 = scalar_lea.hbm %s4645_s4, 256 }
  0xe6   : > { %p3456_p12 = scmp.ne.s32.totalorder %s4645_s4, %s3455_s26  ;;  %p3462_p1 = scmp.lt.u32.totalorder %s3455_s26, %s4645_s4 }
  0xe8   : > { %p3458_p6 = pnand %p3456_p12, %p4643_p4 }
  0xea   : > { %p3459_p7 = pneg %p3458_p6 }
  0xec   : > { %p3464_p5 = pnand %p3462_p1, %p3459_p7 }
  0xee   : > { %3467 = shalt.err (!%p3464_p5)
}
  0xef   : > { %s3468_s11 = scalar_lea.vmem %s607_s18, 256  ;;  %p3476_p2 = scmp.lt.s32.totalorder %s607_s18, %s607_s18 }
  0xf0   : > { %p3469_p3 = scmp.ne.s32.totalorder %s607_s18, %s3468_s11  ;;  %p3477_p11 = scmp.lt.s32.totalorder %s3468_s11, %s3468_s11 }
  0xf2   : > { %p3471_p8 = pnand %p3469_p3, %p4643_p4  ;;  %p3478_p9 = por %p3477_p11, %p3476_p2 }
  0xf4   : > { %p3472_p10 = pneg %p3471_p8 }
  0xf6   : > { %p3479_p0 = pnand %p3478_p9, %p3472_p10 }
  0xf8   : > { %3482 = shalt.err (!%p3479_p0)
}
  0xf9   : > { %3089 = dma.hbm_to_vmem [thread:$0]  (!%p4644_p13), %s4645_s4, 256, %s607_s18, [#allocation8], %s4640_s29, %s4640_s29, %s4639_s16  }
  0xfa   : > { %s4646_s5 = sld [smem:[#allocation32_spill]] }
 0x100   : > { %s3483_s17 = scalar_lea.hbm %s4646_s5, 256 }
 0x101   : > { %p3484_p12 = scmp.ne.s32.totalorder %s4646_s5, %s3483_s17  ;;  %p3490_p6 = scmp.lt.u32.totalorder %s3483_s17, %s4646_s5 }
 0x103   : > { %p3486_p0 = pnand %p3484_p12, %p4643_p4 }
 0x105   : > { %p3487_p9 = pneg %p3486_p0 }
 0x107   : > { %p3492_p7 = pnand %p3490_p6, %p3487_p9 }
 0x109   : > { %3495 = shalt.err (!%p3492_p7)
}
 0x10a   : > { %s3496_s18 = scalar_lea.vmem %s4009_s23, 256  ;;  %p3504_p8 = scmp.lt.s32.totalorder %s4009_s23, %s4009_s23 }
 0x10b   : > { %p3497_p1 = scmp.ne.s32.totalorder %s4009_s23, %s3496_s18  ;;  %p3505_p10 = scmp.lt.s32.totalorder %s3496_s18, %s3496_s18 }
 0x10d   : > { %p3499_p5 = pnand %p3497_p1, %p4643_p4  ;;  %p3506_p2 = por %p3505_p10, %p3504_p8 }
 0x10f   : > { %p3500_p3 = pneg %p3499_p5 }
 0x111   : > { %p3507_p11 = pnand %p3506_p2, %p3500_p3 }
 0x113   : > { %3510 = shalt.err (!%p3507_p11)
}
 0x114   : > { %3092 = dma.hbm_to_vmem [thread:$0]  (!%p4644_p13), %s4646_s5, 256, %s4009_s23, [#allocation11], %s4640_s29, %s4640_s29, %s4639_s16  }
 0x115   : > { %s4647_s2 = sshll.u32 %s3603_s0, 4  ;;  %s751_s24 = scalar_lea.vmem [#allocation16], %s3829_s10 }
 0x116   : > { %s4063_s1 = scalar_lea.hbm %s4574_s15, %s4647_s2  ;;  %s758_s17 = sshll.u32 %s751_s24, 4  ;;  %s759_s17 = int_to_ptr.vmem [resolvable:$true] %s758_s17 }
 0x117   : > { %s3511_s26 = scalar_lea.hbm %s4063_s1, 16  ;;  %p4648_p12 = scmp.ne.s32.totalorder %s4634_s14, 0 }
 0x118   : > { %p3512_p4 = scmp.ne.s32.totalorder %s4063_s1, %s3511_s26  ;;  %s3516_s29 = scalar_lea.hbm %s4574_s15, 32 }
 0x119   : > { %p3517_p13 = scmp.lt.u32.totalorder %s4063_s1, %s4574_s15  ;;  %p3518_p6 = scmp.lt.u32.totalorder %s3516_s29, %s3511_s26 }
 0x11a   : > { %p3514_p0 = pnand %p3512_p4, %p4648_p12  ;;  %p3520_p1 = scmp.lt.u32.totalorder %s3511_s26, %s4063_s1 }
 0x11b   : > { %p3519_p7 = por %p3518_p6, %p3517_p13 }
 0x11c   : > { %p3515_p9 = pneg %p3514_p0 }
 0x11d   : > { %p3521_p5 = por %p3520_p1, %p3519_p7 }
 0x11f   : > { %p3522_p3 = pnand %p3521_p5, %p3515_p9 }
 0x121   : > { %3525 = shalt.err (!%p3522_p3)
}
 0x122   : > { %s3526_s10 = scalar_lea.vmem %s759_s17, 16  ;;  %s3622_s8 = smov [#allocation16]  }
 0x123   : > { %p3527_p8 = scmp.ne.s32.totalorder %s759_s17, %s3526_s10  ;;  %s3531_s18 = sshll.u32 %s3622_s8, 4  ;;  %s3532_s18 = int_to_ptr.vmem [resolvable:$false] %s3531_s18 }
 0x124   : > { %s3533_s11 = scalar_lea.vmem %s3532_s18, 32  ;;  %p3534_p11 = scmp.lt.s32.totalorder %s759_s17, %s3532_s18 }
 0x125   : > { %p3529_p10 = pnand %p3527_p8, %p4648_p12  ;;  %p3535_p4 = scmp.lt.s32.totalorder %s3533_s11, %s3526_s10 }
 0x127   : > { %p3530_p2 = pneg %p3529_p10  ;;  %p3536_p0 = por %p3535_p4, %p3534_p11 }
 0x129   : > { %p3537_p6 = pnand %p3536_p0, %p3530_p2 }
 0x12b   : > { %3540 = shalt.err (!%p3537_p6)
}
 0x12c   : > { %p4649_p13 = scmp.ne.s32.totalorder %s4633_s27, 0  ;;  %p4650_p9 = scmp.ne.s32.totalorder %s4626_s22, 0 }
 0x12d   : > { %p4651_p12 = scmp.ne.s32.totalorder (!%p4650_p9), %s4623_s20, 0 }
 0x12e   : > { %3108 = dma.hbm_to_vmem [thread:$0]  (!%p4649_p13), %s4063_s1, 16, %s759_s17, %s3853_s25  }
 0x12f   : > { %779 = sbr.rel (%p4650_p9) target bundleno = 2970 (0xb9a), region = 92 }
 0x136   : > { %3566 = dma.done.wait (%p4651_p12), [#allocation5], 16  }
 0x137   : > { %3568 = vsyncadd (%p4651_p12), [#allocation5], 4294967280 }
 0x138   : > { %3570 = dma.done.wait (%p4651_p12), [#allocation4], 256  }
 0x139   : > { %3572 = vsyncadd (%p4651_p12), [#allocation4], 4294967040 }
 0x13a   : > { %3574 = dma.done.wait (%p4651_p12), [#allocation8], 512  }
 0x13b   : > { %3576 = vsyncadd (%p4651_p12), [#allocation8], 4294966784 }
 0x13c   : > { %3578 = dma.done.wait (%p4651_p12), [#allocation11], 256  }
 0x13d   : > { %3580 = vsyncadd (%p4651_p12), [#allocation11], 4294967040  ;;  %s4652_s22 = sadd.s32 4294967295, %s3607_s19   ;;  %s4653_s25 = sld [smem:[#allocation24_spill]] }
 0x13e   : > { %s801_s27 = sand.u32 1, %s4652_s22   ;;  %s4105_s14 = sand.u32 1, %s3591_s28  }
 0x13f   : > { %s4108_s30 = sshll.u32 %s4105_s14, 4  ;;  %s802_s2 = scalar_lea.sflag [#allocation4], %s801_s27 }
 0x143   : > { %p4654_p7 = scmp.ne.s32.totalorder %s4653_s25, 0 }
 0x145   : > { %3582 = dma.done.wait (%p4654_p7), %s802_s2, 800  }
 0x146   : > { %3584 = vsyncadd (%p4654_p7), %s802_s2, 4294966496 }
 0x147   : > { %844 = sfence }
 0x148   : > { %s4655_s17 = sld [smem:[#allocation23_spill]]  ;;  %s4660_s9 = sld [smem:[#allocation40_spill]] }
 0x149   : > { %s4659_s1 = sld [smem:[#allocation38_spill]]  ;;  %s4661_s29 = sld [smem:[#allocation39_spill]] }
 0x14a   : > { %s4662_s8 = sld [smem:[#allocation41_spill]]  ;;  %s4663_s27 = sld [smem:[#allocation42_spill]] }
 0x14e   : > { %p951_p1 = scmp.lt.s32.totalorder %s4655_s17, 1  ;;  %p2820_p5 = scmp.ne.s32.totalorder %s4655_s17, 0 }
 0x14f   : > { %v989_v0 = vld [vmem:[#allocation6] sm:$0xff] (!%p2820_p5)  ;;  %vm991_vm0 = vcmask (!%p2820_p5), 261120   ;;  %v990_v1 = vld [vmem:[#allocation6 + $0x8] sm:$0xff] (!%p2820_p5) }
 0x150   : > { %s4121_s26 = scalar_select %p951_p1, %s4655_s17, 1 }
 0x151   : > { %988 = sbr.rel (%p2820_p5) target bundleno = 344 (0x158), region = 136  ;;  %992 = vst.msk [vmem:[#allocation2] sm:$0xff] (!%p2820_p5), %vm991_vm0, %v989_v0  ;;  %993 = vst.msk [vmem:[#allocation2 + $0x8] sm:$0xff] (!%p2820_p5), %vm991_vm0, %v990_v1 }
 0x152   : > { %s962_s7 = scalar_lea.vmem %s4659_s1, %s4121_s26  ;;  %s2867_s16 = sshll.u32 %s4121_s26, 5 }
 0x153   : > { %s970_s3 = scalar_lea.vmem %s4660_s9, %s4121_s26  ;;  %s4147_s23 = scalar_lea.vmem %s4661_s29, %s2867_s16 }
 0x154   : > { %s973_s18 = scalar_lea.vmem %s4662_s8, %s4121_s26  ;;  %s2868_s11 = sshll.u32 %s4121_s26, 4 }
 0x155   : > { %s4157_s24 = scalar_lea.vmem %s4663_s27, %s2868_s11 }
 0x158 PF: > { %s4664_s4 = scalar_lea.vmem [#allocation12], %s4108_s30  ;;  %v3623_v3 = vmov 0.0   ;;  %vm3624_vm1 = vmmov 0   ;;  %v994_v5 = vld [vmem:[#allocation2] sm:$0xff]  ;;  %v995_v6 = vld [vmem:[#allocation2 + $0x8] sm:$0xff]  ;;  %vm1020_vm2 = vcmask 261120  }
 0x159   : > { %v3208_v2 = vld [vmem:[%s4664_s4] sm:$0xff]   ;;  %2915 = vmatprep.subr.bf16.mxu0 %v3623_v3  ;;  %2923 = vmatprep.subr.bf16.mxu1 %v3623_v3  ;;  %s4665_s5 = smov %s4664_s4  ;;  %v996_v7 = vpack.c.bf16 %v995_v6, %v994_v5  ;;  %s4666_s6 = sld [smem:[#allocation34_spill]]  ;;  %vm1171_vm3 = vcmask 64512   ;;  %v1635_v0 = vld [vmem:[#allocation7 + $0x8] sm:$0xff] }
 0x15a   : > { %2916 = vmatpush3.bf16.msra.mxu0 %v3208_v2  ;;  %v3209_v4 = vld [vmem:[%s4665_s5 + $0x8] sm:$0xff]   ;;  %2919 = vmatprep.mubr.msk.bf16.mxu0 %vm3624_vm1, %v3623_v3  ;;  %s3625_s17 = smov 120   ;;  %s3626_s27 = smov 96   ;;  %v1067_v39 = vld [vmem:[#allocation7] sm:$0xff]  ;;  %v1098_v51 = vld [vmem:[#allocation9] sm:$0xff]  ;;  %vm1636_vm14 = vcmp.eq.s32.totalorder %v1635_v0, 1 }
 0x15b   : > { %2917 = vmatprep.subr.bf16.mxu0 %v3623_v3  ;;  %2925 = vmatprep.mubr.msk.bf16.mxu1 %vm3624_vm1, %v3623_v3  ;;  %s3627_s2 = smov 80   ;;  %s3628_s16 = smov 88   ;;  %vm1068_vm4 = vcmp.eq.s32.totalorder %v1067_v39, 1  ;;  %vm1074_vm5 = vcmp.eq.s32.totalorder %v1067_v39, 2  ;;  %vm1080_vm6 = vcmp.eq.s32.totalorder %v1067_v39, 3  ;;  %vm1086_vm7 = vcmp.eq.s32.totalorder %v1067_v39, 4 }
 0x15c   : > { %s3629_s29 = smov 72   ;;  %s3630_s21 = smov 112   ;;  %vm1092_vm8 = vcmp.eq.s32.totalorder %v1067_v39, 5  ;;  %vm1099_vm9 = vcmp.eq.s32.totalorder %v1098_v51, 1  ;;  %vm1105_vm10 = vcmp.eq.s32.totalorder %v1098_v51, 2  ;;  %vm1111_vm11 = vcmp.eq.s32.totalorder %v1098_v51, 3 }
 0x15d   : > { %s3631_s10 = smov 104   ;;  %s4668_s8 = sld [smem:[#allocation23_spill]]  ;;  %vm1117_vm12 = vcmp.eq.s32.totalorder %v1098_v51, 4  ;;  %vm1123_vm13 = vcmp.eq.s32.totalorder %v1098_v51, 5  ;;  %vm1639_vm15 = vcmp.eq.s32.totalorder %v1635_v0, 2  ;;  %v1129_v5 = vld [vmem:[#allocation10] sm:$0xff] }
 0x15e   : > { %2918 = vmatpush3.bf16.msra.mxu0 %v3209_v4  ;;  %vm1130_vm0 = vcmp.eq.s32.totalorder %v1129_v5, 1 }
 0x15f   : > { %2929 = vmatprep.subr.bf16.mxu0 %v3623_v3  ;;  %s4667_s1 = scalar_lea.vmem %s4666_s6, %s4121_s26 }
 0x160   : > { %v2821_v8 = vld [vmem:[%s4667_s1] ss:$0 sm:$0xff] }
 0x161   : > { %2920 = vmatmul.mubr.msk.bf16.vlgmr.msra.gmra.mrb[0].mxu0 %vm1020_vm2, %v996_v7 }
 0x162   : > { %2931 = vmatprep.mubr.msk.bf16.mxu0 %vm3624_vm1, %v3623_v3 }
 0x163   : > { %s4242_s11 = smul.u32 18, %s4668_s8 }
 0x165   : > { %s1069_s22 = sadd.s32 1, %s4242_s11  ;;  %s1075_s25 = sadd.s32 2, %s4242_s11 }
 0x166   : > { %s4246_s4 = sld [smem:[#allocation3 + %s1069_s22]]  ;;  %s1081_s9 = sadd.s32 3, %s4242_s11 }
 0x167   : > { %s4248_s5 = sld [smem:[#allocation3 + %s1075_s25]]  ;;  %s1087_s6 = sadd.s32 4, %s4242_s11 }
 0x168   : > { %s4251_s20 = sld [smem:[#allocation3 + %s1081_s9]]  ;;  %s1118_s22 = sadd.s32 10, %s4242_s11 }
 0x169   : > { %s4256_s1 = sld [smem:[#allocation3 + %s1087_s6]]  ;;  %s1131_s9 = sadd.s32 13, %s4242_s11 }
 0x16a   : > { %s4282_s25 = sld [smem:[#allocation3 + %s1118_s22]]  ;;  %s1137_s6 = sadd.s32 14, %s4242_s11 }
 0x16c   : > { %v1071_v40 = vstv %s4246_s4  ;;  %s1124_s4 = sadd.s32 11, %s4242_s11 }
 0x16d   : > { %v1077_v41 = vstv %s4248_s5  ;;  %v1072_v42 = vsel %vm1068_vm4, %v1071_v40, 0.0  ;;  %s4288_s5 = sld [smem:[#allocation3 + %s1124_s4]]  ;;  %vm1642_vm4 = vcmp.eq.s32.totalorder %v1635_v0, 3  ;;  %s1155_s4 = sadd.s32 17, %s4242_s11 }
 0x16e   : > { %v1078_v43 = vsel %vm1074_vm5, %v1077_v41, 0.0  ;;  %v1083_v44 = vstv %s4251_s20  ;;  %s4294_s20 = sld [smem:[#allocation3 + %s1131_s9]]  ;;  %vm1136_vm5 = vcmp.eq.s32.totalorder %v1129_v5, 2 }
 0x16f   : > { %v1079_v45 = vadd.f32 %v1078_v43, %v1072_v42  ;;  %v1084_v46 = vsel %vm1080_vm6, %v1083_v44, 0.0  ;;  %v1089_v47 = vstv %s4256_s1  ;;  %vm1645_vm6 = vcmp.eq.s32.totalorder %v1635_v0, 4  ;;  %s4320_s9 = sld [smem:[#allocation3 + %s1155_s4]] }
 0x170   : > { %v1090_v49 = vsel %vm1086_vm7, %v1089_v47, 0.0  ;;  %v1120_v63 = vstv %s4282_s25  ;;  %vm1142_vm7 = vcmp.eq.s32.totalorder %v1129_v5, 3  ;;  %s3633_s25 = smov 64  }
 0x171   : > { %v1085_v48 = vadd.f32 %v1084_v46, %v1079_v45  ;;  %v1121_v2 = vsel %vm1117_vm12, %v1120_v63, 0.0 }
 0x173   : > { %v1091_v52 = vadd.f32 %v1090_v49, %v1085_v48  ;;  %v1126_v4 = vstv %s4288_s5  ;;  %v1669_v49 = vld [vmem:[#allocation10 + $0x8] sm:$0xff]  ;;  %s3634_s5 = smov 48  }
 0x174   : > { %v1127_v7 = vsel %vm1123_vm13, %v1126_v4, 0.0 }
 0x234   : > { %v1058_v9 = vpop.f32.mrb[0].mxu0 }
 0x235   : > { %v2921_v10 = vpop.f32.mrb[1].mxu0  ;;  %v1059_v12 = vadd.f32 %v2821_v8, %v1058_v9  ;;  %v1640_v9 = vsel %vm1639_vm15, %v1077_v41, 0.0 }
 0x236   : > { %v1061_v11 = vpop.f32.mrb[2].mxu0  ;;  %v1133_v10 = vstv %s4294_s20  ;;  %s3635_s20 = smov 40  }
 0x237   : > { %v1062_v13 = vadd.f32 %v2821_v8, %v1061_v11  ;;  %v2922_v14 = vpop.f32.mrb[3].mxu0  ;;  %v1637_v8 = vsel %vm1636_vm14, %v1071_v40, 0.0 }
 0x238   : > { %v1643_v14 = vsel %vm1642_vm4, %v1083_v44, 0.0  ;;  %vm1673_vm4 = vcmp.eq.s32.totalorder %v1669_v49, 2 }
 0x239   : > { %v4180_v15 = vpack.c.bf16 %v1062_v13, %v1059_v12  ;;  %v1641_v12 = vadd.f32 %v1640_v9, %v1637_v8  ;;  %v1134_v13 = vsel %vm1130_vm0, %v1133_v10, 0.0  ;;  %vm1670_vm0 = vcmp.eq.s32.totalorder %v1669_v49, 1 }
 0x23b   : > { %1281 = vrot.lane.b32.xlu1 %v4180_v15, %s3625_s17  ;;  %1169 = vrot.lane.b32.xlu0 %v4180_v15, %s3626_s27  ;;  %v4189_v16 = vrot.slane %v4180_v15, 4 }
 0x23f   : > { %1395 = vrot.lane.b32.xlu1 %v4180_v15, %s3627_s2  ;;  %1283 = vrot.lane.b32.xlu0 %v4180_v15, %s3628_s16 }
 0x243   : > { %1507 = vrot.lane.b32.xlu1 %v4180_v15, %s3629_s29  ;;  %1393 = vrot.lane.b32.xlu0 %v4180_v15, %s3630_s21 }
 0x247   : > { %1505 = vrot.lane.b32.xlu0 %v4180_v15, %s3631_s10  ;;  %1695 = vrot.lane.b32.xlu1 %v4189_v16, %s3626_s27 }
 0x24b   : > { %1807 = vrot.lane.b32.xlu0 %v4189_v16, %s3628_s16  ;;  %1805 = vrot.lane.b32.xlu1 %v4189_v16, %s3625_s17  ;;  %s1093_s17 = sadd.s32 5, %s4242_s11 }
 0x24c   : > { %s4260_s27 = sld [smem:[#allocation3 + %s1093_s17]] }
 0x24d   : > { %s4300_s17 = sld [smem:[#allocation3 + %s1137_s6]] }
 0x24f   : > { %1919 = vrot.lane.b32.xlu0 %v4189_v16, %s3627_s2  ;;  %1917 = vrot.lane.b32.xlu1 %v4189_v16, %s3630_s21  ;;  %s1100_s2 = sadd.s32 7, %s4242_s11 }
 0x250   : > { %s4264_s16 = sld [smem:[#allocation3 + %s1100_s2]]  ;;  %s1143_s2 = sadd.s32 15, %s4242_s11 }
 0x252   : > { %v1095_v50 = vstv %s4260_s27  ;;  %s4669_s27 = sld [smem:[#allocation29_spill]] }
 0x253   : > { %2031 = vrot.lane.b32.xlu0 %v4189_v16, %s3629_s29  ;;  %2029 = vrot.lane.b32.xlu1 %v4189_v16, %s3631_s10  ;;  %s1106_s29 = sadd.s32 8, %s4242_s11  ;;  %s1112_s10 = sadd.s32 9, %s4242_s11  ;;  %v1096_v53 = vsel %vm1092_vm8, %v1095_v50, 0.0  ;;  %vm1648_vm8 = vcmp.eq.s32.totalorder %v1635_v0, 5 }
 0x254   : > { %s4270_s21 = sld [smem:[#allocation3 + %s1106_s29]]  ;;  %v1097_v55 = vadd.f32 %v1096_v53, %v1091_v52 }
 0x255   : > { %s4276_s8 = sld [smem:[#allocation3 + %s1112_s10]]  ;;  %s1149_s10 = sadd.s32 16, %s4242_s11 }
 0x256   : > { %v1102_v54 = vstv %s4264_s16  ;;  %s4306_s29 = sld [smem:[#allocation3 + %s1143_s2]]  ;;  %s3636_s2 = smov 8  }
 0x257   : > { %v1103_v56 = vsel %vm1099_vm9, %v1102_v54, 0.0  ;;  %s4312_s22 = sld [smem:[#allocation3 + %s1149_s10]]  ;;  %vm1148_vm9 = vcmp.eq.s32.totalorder %v1129_v5, 4  ;;  %s3637_s10 = smov 16  }
 0x258   : > { %v1104_v58 = vadd.f32 %v1103_v56, %v1097_v55  ;;  %s4670_s6 = smov %s4669_s27  ;;  %v2825_v40 = vld [vmem:[%s4669_s27] ss:$0 sm:$0xff]  ;;  %s4673_s11 = sld [smem:[#allocation36_spill]] }
 0x259   : > { %s4675_s27 = scalar_lea.vmem [#allocation14], %s4108_s30 }
 0x25a   : > { %v1108_v57 = vstv %s4270_s21  ;;  %s4676_s16 = smov %s4675_s27 }
 0x25b   : > { %v1109_v59 = vsel %vm1105_vm10, %v1108_v57, 0.0  ;;  %v1114_v60 = vstv %s4276_s8  ;;  %s3632_s8 = smov 56  }
 0x25c   : > { %v1110_v61 = vadd.f32 %v1109_v59, %v1104_v58  ;;  %v1115_v62 = vsel %vm1111_vm11, %v1114_v60, 0.0  ;;  %vm1154_vm11 = vcmp.eq.s32.totalorder %v1129_v5, 5 }
 0x25e   : > { %v1116_v1 = vadd.f32 %v1115_v62, %v1110_v61  ;;  %s4674_s1 = scalar_lea.vmem %s4673_s11, %s4121_s26 }
 0x260   : > { %v1122_v6 = vadd.f32 %v1121_v2, %v1116_v1 }
 0x262   : > { %v1128_v11 = vadd.f32 %v1127_v7, %v1122_v6 }
 0x2ad   : > { %v1170_v17 = vpop.permute.xlu0 %1169  ;;  %v1282_v20 = vpop.permute.xlu1 %1281 }
 0x2ae   : > { %v1176_v18 = vsel %vm1171_vm3, %v1170_v17, 0  ;;  %v1139_v17 = vstv %s4300_s17  ;;  %s4671_s17 = scalar_lea.vmem [#allocation13], %s4108_s30 }
 0x2af   : > { %2924 = vmatpush3.bf16.xpose.msra.mxu1 %v1176_v18  ;;  %v1135_v18 = vadd.f32 %v1134_v13, %v1128_v11  ;;  %v1674_v0 = vsel %vm1673_vm4, %v1139_v17, 0.0 }
 0x2b0   : > { %2935 = vmatprep.subr.bf16.mxu1 %v3623_v3 }
 0x2b1   : > { %v1284_v19 = vpop.permute.xlu0 %1283  ;;  %v1396_v22 = vpop.permute.xlu1 %1395 }
 0x2b2   : > { %v1289_v21 = vsel %vm1171_vm3, %v1284_v19, 0  ;;  %v1401_v23 = vsel %vm1171_vm3, %v1396_v22, 0  ;;  %v1644_v19 = vadd.f32 %v1643_v14, %v1641_v12  ;;  %v1145_v22 = vstv %s4306_s29  ;;  %s4672_s29 = smov %s4671_s17 }
 0x2b5   : > { %v1508_v24 = vpop.permute.xlu1 %1507  ;;  %v1394_v25 = vpop.permute.xlu0 %1393 }
 0x2b6   : > { %2926 = vmatmul.mubr.msk.bf16.vlgmr.msra.gmra.mrb[0].mxu1 %vm1171_vm3, %v4180_v15  ;;  %v1513_v26 = vsel %vm1171_vm3, %v1508_v24, 0 }
 0x2b7   : > { %2936 = vmatpush3.bf16.xpose.msra.mxu1 %v1289_v21  ;;  %2937 = vmatprep.mubr.msk.bf16.mxu1 %vm3624_vm1, %v3623_v3  ;;  %v1646_v21 = vsel %vm1645_vm6, %v1089_v47, 0.0  ;;  %vm1679_vm6 = vcmp.eq.s32.totalorder %v1669_v49, 4 }
 0x2b8   : > { %2947 = vmatprep.subr.bf16.mxu1 %v3623_v3 }
 0x2b9   : > { %v1696_v27 = vpop.permute.xlu1 %1695  ;;  %v1506_v28 = vpop.permute.xlu0 %1505 }
 0x2ba   : > { %v1701_v29 = vsel %vm1171_vm3, %v1696_v27, 0  ;;  %v1649_v27 = vsel %vm1648_vm8, %v1095_v50, 0.0  ;;  %vm1237_vm8 = vcmask 1043456  }
 0x2bd   : > { %v1808_v30 = vpop.permute.xlu0 %1807  ;;  %v1806_v33 = vpop.permute.xlu1 %1805 }
 0x2be   : > { %2938 = vmatmul.mubr.msk.bf16.vlgmr.msra.gmra.mrb[4].mxu1 %vm1171_vm3, %v1282_v20  ;;  %v1813_v31 = vsel %vm1171_vm3, %v1808_v30, 0  ;;  %v1140_v20 = vsel %vm1136_vm5, %v1139_v17, 0.0  ;;  %vm1676_vm5 = vcmp.eq.s32.totalorder %v1669_v49, 3 }
 0x2bf   : > { %2948 = vmatpush3.bf16.xpose.msra.mxu1 %v1401_v23  ;;  %2949 = vmatprep.mubr.msk.bf16.mxu1 %vm3624_vm1, %v3623_v3  ;;  %v1652_v23 = vld [vmem:[#allocation9 + $0x8] sm:$0xff]  ;;  %v1141_v24 = vadd.f32 %v1140_v20, %v1135_v18  ;;  %v1677_v5 = vsel %vm1676_vm5, %v1145_v22, 0.0 }
 0x2c0   : > { %2959 = vmatprep.subr.bf16.mxu1 %v3623_v3  ;;  %vm1653_vm10 = vcmp.eq.s32.totalorder %v1652_v23, 1  ;;  %vm1656_vm12 = vcmp.eq.s32.totalorder %v1652_v23, 2  ;;  %vm1659_vm13 = vcmp.eq.s32.totalorder %v1652_v23, 3  ;;  %vm1662_vm14 = vcmp.eq.s32.totalorder %v1652_v23, 4 }
 0x2c1   : > { %v1920_v32 = vpop.permute.xlu0 %1919  ;;  %v1918_v36 = vpop.permute.xlu1 %1917  ;;  %v1660_v41 = vsel %vm1659_vm13, %v1114_v60, 0.0  ;;  %v1663_v45 = vsel %vm1662_vm14, %v1120_v63, 0.0  ;;  %vm1665_vm15 = vcmp.eq.s32.totalorder %v1652_v23, 5 }
 0x2c2   : > { %v1925_v34 = vsel %vm1171_vm3, %v1920_v32, 0  ;;  %v1654_v32 = vsel %vm1653_vm10, %v1102_v54, 0.0  ;;  %v1666_v53 = vsel %vm1665_vm15, %v1126_v4, 0.0  ;;  %vm1632_vm10 = vcmask 195584  }
 0x2c5   : > { %v2032_v35 = vpop.permute.xlu0 %2031  ;;  %v2030_v38 = vpop.permute.xlu1 %2029 }
 0x2c6   : > { %2950 = vmatmul.mubr.msk.bf16.vlgmr.msra.gmra.mrb[8].mxu1 %vm1171_vm3, %v1394_v25  ;;  %v2037_v37 = vsel %vm1171_vm3, %v2032_v35, 0  ;;  %v1647_v25 = vadd.f32 %v1646_v21, %v1644_v19 }
 0x2c7   : > { %2960 = vmatpush3.bf16.xpose.msra.mxu1 %v1513_v26  ;;  %2961 = vmatprep.mubr.msk.bf16.mxu1 %vm3624_vm1, %v3623_v3  ;;  %v1146_v26 = vsel %vm1142_vm7, %v1145_v22, 0.0  ;;  %vm1682_vm7 = vcmp.eq.s32.totalorder %v1669_v49, 5 }
 0x2c8   : > { %2971 = vmatprep.subr.bf16.mxu1 %v3623_v3  ;;  %v1650_v30 = vadd.f32 %v1649_v27, %v1647_v25  ;;  %v2835_v25 = vld [vmem:[%s4670_s6 + $0x1] ss:$0 sm:$0xff] }
 0x2ca   : > { %v1655_v35 = vadd.f32 %v1654_v32, %v1650_v30 }
 0x2ce   : > { %2962 = vmatmul.mubr.msk.bf16.vlgmr.msra.gmra.mrb[12].mxu1 %vm1171_vm3, %v1506_v28  ;;  %v1151_v28 = vstv %s4312_s22  ;;  %s3638_s22 = smov 24  }
 0x2cf   : > { %2972 = vmatpush3.bf16.xpose.msra.mxu1 %v1701_v29  ;;  %2973 = vmatprep.mubr.msk.bf16.mxu1 %vm3624_vm1, %v3623_v3  ;;  %v1147_v29 = vadd.f32 %v1146_v26, %v1141_v24  ;;  %v1680_v12 = vsel %vm1679_vm6, %v1151_v28, 0.0 }
 0x2d0   : > { %2983 = vmatprep.subr.bf16.mxu1 %v3623_v3 }
 0x2d6   : > { %2974 = vmatmul.mubr.msk.bf16.vlgmr.msra.gmra.mrb[16].mxu1 %vm1171_vm3, %v4189_v16 }
 0x2d7   : > { %2984 = vmatpush3.bf16.xpose.msra.mxu1 %v1813_v31  ;;  %2985 = vmatprep.mubr.msk.bf16.mxu1 %vm3624_vm1, %v3623_v3  ;;  %v1152_v31 = vsel %vm1148_vm9, %v1151_v28, 0.0  ;;  %vm1630_vm9 = vcmask 130048  }
 0x2d8   : > { %2995 = vmatprep.subr.bf16.mxu1 %v3623_v3 }
 0x2de   : > { %2986 = vmatmul.mubr.msk.bf16.vlgmr.msra.gmra.mrb[20].mxu1 %vm1171_vm3, %v1806_v33  ;;  %v1157_v33 = vstv %s4320_s9 }
 0x2df   : > { %2996 = vmatpush3.bf16.xpose.msra.mxu1 %v1925_v34  ;;  %2997 = vmatprep.mubr.msk.bf16.mxu1 %vm3624_vm1, %v3623_v3  ;;  %v1153_v34 = vadd.f32 %v1152_v31, %v1147_v29  ;;  %v1683_v18 = vsel %vm1682_vm7, %v1157_v33, 0.0 }
 0x2e0   : > { %3007 = vmatprep.subr.bf16.mxu1 %v3623_v3 }
 0x2e6   : > { %2998 = vmatmul.mubr.msk.bf16.vlgmr.msra.gmra.mrb[24].mxu1 %vm1171_vm3, %v1918_v36  ;;  %v1158_v36 = vsel %vm1154_vm11, %v1157_v33, 0.0 }
 0x2e7   : > { %3008 = vmatpush3.bf16.xpose.msra.mxu1 %v2037_v37  ;;  %3009 = vmatprep.mubr.msk.bf16.mxu1 %vm3624_vm1, %v3623_v3  ;;  %v1657_v37 = vsel %vm1656_vm12, %v1108_v57, 0.0  ;;  %v1671_v57 = vsel %vm1670_vm0, %v1133_v10, 0.0 }
 0x2e8   : > { %3019 = vmatprep.subr.bf16.mxu1 %v3623_v3  ;;  %v1658_v39 = vadd.f32 %v1657_v37, %v1655_v35 }
 0x2ea   : > { %v1661_v43 = vadd.f32 %v1660_v41, %v1658_v39 }
 0x2ec   : > { %v1664_v52 = vadd.f32 %v1663_v45, %v1661_v43 }
 0x2ee   : > { %3010 = vmatmul.mubr.msk.bf16.vlgmr.msra.gmra.mrb[28].mxu1 %vm1171_vm3, %v2030_v38  ;;  %v1159_v38 = vadd.f32 %v1158_v36, %v1153_v34  ;;  %v1667_v55 = vadd.f32 %v1666_v53, %v1664_v52 }
 0x2ef   : > { %3023 = vmatprep.mubr.msk.bf16.mxu1 %vm3624_vm1, %v3623_v3 }
 0x2f0   : > { %v1167_v42 = vadd.f32 %v2825_v40, %v1159_v38  ;;  %v1672_v63 = vadd.f32 %v1671_v57, %v1667_v55 }
 0x2f2   : > { %v1675_v2 = vadd.f32 %v1674_v0, %v1672_v63 }
 0x2f4   : > { %v1678_v11 = vadd.f32 %v1677_v5, %v1675_v2 }
 0x2f6   : > { %v1681_v14 = vadd.f32 %v1680_v12, %v1678_v11 }
 0x2f8   : > { %v1684_v24 = vadd.f32 %v1683_v18, %v1681_v14 }
 0x2fa   : > { %v1693_v27 = vadd.f32 %v2835_v25, %v1684_v24 }
 0x389   : > { %v1212_v44 = vpop.f32.mrb[0].mxu1 }
 0x38a   : > { %v1218_v46 = vmul.f32 0.35355338, %v1212_v44  ;;  %v2927_v47 = vpop.f32.mrb[1].mxu1 }
 0x38b   : > { %v1215_v48 = vpop.f32.mrb[2].mxu1 }
 0x38c   : > { %v2928_v50 = vpop.f32.mrb[3].mxu1  ;;  %v4337_v51 = vadd.f32 %v1218_v46, %v1167_v42 }
 0x38e   : > { %v1220_v54 = vsel %vm1171_vm3, %v4337_v51, -inf }
 0x38f   : > { %1221 = vmax.xlane.f32.xlu0 %v1220_v54 }
 0x391   : > { %v1325_v56 = vpop.f32.mrb[4].mxu1 }
 0x392   : > { %v1331_v58 = vmul.f32 0.35355338, %v1325_v56  ;;  %v2939_v59 = vpop.f32.mrb[5].mxu1 }
 0x393   : > { %v1328_v60 = vpop.f32.mrb[6].mxu1 }
 0x394   : > { %v2940_v61 = vpop.f32.mrb[7].mxu1  ;;  %v4345_v62 = vadd.f32 %v1331_v58, %v1167_v42 }
 0x396   : > { %v1333_v1 = vsel %vm1171_vm3, %v4345_v62, -inf }
 0x397   : > { %1334 = vmax.xlane.f32.xlu1 %v1333_v1 }
 0x399   : > { %v1437_v4 = vpop.f32.mrb[8].mxu1 }
 0x39a   : > { %v1443_v6 = vmul.f32 0.35355338, %v1437_v4  ;;  %v2951_v7 = vpop.f32.mrb[9].mxu1 }
 0x39b   : > { %v1440_v8 = vpop.f32.mrb[10].mxu1 }
 0x39c   : > { %v2952_v9 = vpop.f32.mrb[11].mxu1  ;;  %v4351_v10 = vadd.f32 %v1443_v6, %v1167_v42 }
 0x39e   : > { %v1445_v13 = vsel %vm1171_vm3, %v4351_v10, -inf }
 0x39f   : > { %1446 = vmax.xlane.f32.xlu0 %v1445_v13 }
 0x3a1   : > { %v1549_v17 = vpop.f32.mrb[12].mxu1 }
 0x3a2   : > { %v1555_v19 = vmul.f32 0.35355338, %v1549_v17  ;;  %v2963_v20 = vpop.f32.mrb[13].mxu1 }
 0x3a3   : > { %v1552_v21 = vpop.f32.mrb[14].mxu1 }
 0x3a4   : > { %v2964_v22 = vpop.f32.mrb[15].mxu1  ;;  %v4355_v23 = vadd.f32 %v1555_v19, %v1167_v42 }
 0x3a6   : > { %v1557_v26 = vsel %vm1171_vm3, %v4355_v23, -inf }
 0x3a7   : > { %1558 = vmax.xlane.f32.xlu0 %v1557_v26 }
 0x3a9   : > { %v1737_v28 = vpop.f32.mrb[16].mxu1 }
 0x3aa   : > { %v1743_v29 = vmul.f32 0.35355338, %v1737_v28  ;;  %v2975_v30 = vpop.f32.mrb[17].mxu1 }
 0x3ab   : > { %v1740_v31 = vpop.f32.mrb[18].mxu1 }
 0x3ac   : > { %v2976_v32 = vpop.f32.mrb[19].mxu1  ;;  %v4362_v33 = vadd.f32 %v1743_v29, %v1693_v27 }
 0x3ae   : > { %v1745_v34 = vsel %vm1171_vm3, %v4362_v33, -inf }
 0x3af   : > { %1746 = vmax.xlane.f32.xlu1 %v1745_v34 }
 0x3b1   : > { %v1849_v35 = vpop.f32.mrb[20].mxu1 }
 0x3b2   : > { %v1855_v36 = vmul.f32 0.35355338, %v1849_v35  ;;  %v2987_v37 = vpop.f32.mrb[21].mxu1 }
 0x3b3   : > { %v1852_v38 = vpop.f32.mrb[22].mxu1 }
 0x3b4   : > { %v2988_v39 = vpop.f32.mrb[23].mxu1  ;;  %v4366_v40 = vadd.f32 %v1855_v36, %v1693_v27 }
 0x3b6   : > { %v1857_v41 = vsel %vm1171_vm3, %v4366_v40, -inf }
 0x3b7   : > { %1858 = vmax.xlane.f32.xlu0 %v1857_v41 }
 0x3b9   : > { %v1961_v42 = vpop.f32.mrb[24].mxu1 }
 0x3ba   : > { %v1967_v43 = vmul.f32 0.35355338, %v1961_v42  ;;  %v2999_v44 = vpop.f32.mrb[25].mxu1 }
 0x3bb   : > { %v1964_v45 = vpop.f32.mrb[26].mxu1 }
 0x3bc   : > { %v3000_v46 = vpop.f32.mrb[27].mxu1  ;;  %v1968_v47 = vadd.f32 %v1967_v43, %v1693_v27 }
 0x3be   : > { %v1969_v48 = vsel %vm1171_vm3, %v1968_v47, -inf }
 0x3bf   : > { %1970 = vmax.xlane.f32.xlu1 %v1969_v48 }
 0x3c1   : > { %v2073_v49 = vpop.f32.mrb[28].mxu1 }
 0x3c2   : > { %v3011_v50 = vpop.f32.mrb[29].mxu1  ;;  %v2079_v54 = vmul.f32 0.35355338, %v2073_v49 }
 0x3c3   : > { %v2076_v52 = vpop.f32.mrb[30].mxu1 }
 0x3c4   : > { %v3012_v53 = vpop.f32.mrb[31].mxu1  ;;  %v4375_v55 = vadd.f32 %v2079_v54, %v1693_v27 }
 0x3c6   : > { %v2081_v56 = vsel %vm1171_vm3, %v4375_v55, -inf }
 0x3cd   : > { %1345 = vrot.lane.b32.xlu0 %v4180_v15, %s3632_s8 }
 0x3d0   : > { %1232 = vrot.lane.b32.xlu1 %v4180_v15, %s3633_s25 }
 0x3ec   : > { %2082 = vmax.xlane.f32.xlu0 %v2081_v56 }
 0x41c   : > { %v1222_v57 = vpop.xlane.xlu0 %1221 }
 0x41d   : > { %v1223_v58 = vsub.f32 %v4337_v51, %v1222_v57 }
 0x41f   : > { %v1224_v59 = vmul.f32 1.442695, %v1223_v58 }
 0x421   : > { %3218 = vpow2.f32 %v1224_v59 }
 0x424   : > { %v1335_v60 = vpop.xlane.xlu1 %1334 }
 0x425   : > { %v1336_v61 = vsub.f32 %v4345_v62, %v1335_v60 }
 0x427   : > { %v1337_v63 = vmul.f32 1.442695, %v1336_v61 }
 0x429   : > { %3220 = vpow2.f32 %v1337_v63 }
 0x42b   : > { %v4381_v0 = vpop.eup %3218 }
 0x42c   : > { %v1447_v1 = vpop.xlane.xlu0 %1446  ;;  %v1226_v2 = vsel %vm1171_vm3, %v4381_v0, 0.0 }
 0x42d   : > { %v1448_v4 = vsub.f32 %v4351_v10, %v1447_v1  ;;  %1227 = vadd.xlane.f32.xlu1 %v1226_v2 }
 0x42f   : > { %v1449_v5 = vmul.f32 1.442695, %v1448_v4 }
 0x431   : > { %3222 = vpow2.f32 %v1449_v5 }
 0x433   : > { %v4386_v6 = vpop.eup %3220 }
 0x434   : > { %v1339_v51 = vsel %vm1171_vm3, %v4386_v6, 0.0  ;;  %v1559_v11 = vpop.xlane.xlu0 %1558 }
 0x435   : > { %1340 = vadd.xlane.f32.xlu0 %v1339_v51  ;;  %v1560_v13 = vsub.f32 %v4355_v23, %v1559_v11 }
 0x437   : > { %v1561_v14 = vmul.f32 1.442695, %v1560_v13 }
 0x439   : > { %3224 = vpow2.f32 %v1561_v14 }
 0x43b   : > { %v4390_v62 = vpop.eup %3222 }
 0x43c   : > { %v1451_v7 = vsel %vm1171_vm3, %v4390_v62, 0.0  ;;  %v1747_v8 = vpop.xlane.xlu1 %1746 }
 0x43d   : > { %1452 = vadd.xlane.f32.xlu1 %v1451_v7  ;;  %v1748_v17 = vsub.f32 %v4362_v33, %v1747_v8 }
 0x43f   : > { %v1749_v20 = vmul.f32 1.442695, %v1748_v17 }
 0x441   : > { %3226 = vpow2.f32 %v1749_v20 }
 0x443   : > { %v3225_v24 = vpop.eup %3224 }
 0x444   : > { %v1859_v18 = vpop.xlane.xlu0 %1858  ;;  %v1563_v25 = vsel %vm1171_vm3, %v3225_v24, 0.0 }
 0x445   : > { %v1860_v19 = vsub.f32 %v4366_v40, %v1859_v18 }
 0x448   : > { %v1346_v31 = vpop.permute.xlu0 %1345 }
 0x449   : > { %v1351_v42 = vsel %vm1237_vm8, %v1346_v31, 0 }
 0x44b   : > { %1457 = vrot.lane.b32.xlu0 %v4180_v15, %s3634_s5  ;;  %v4404_v26 = vpop.eup %3226 }
 0x44c   : > { %v1971_v9 = vpop.xlane.xlu1 %1970  ;;  %v1751_v27 = vsel %vm1171_vm3, %v4404_v26, 0.0 }
 0x44d   : > { %v1972_v21 = vsub.f32 %v1968_v47, %v1971_v9 }
 0x44e   : > { %1569 = vrot.lane.b32.xlu1 %v4180_v15, %s3635_s20  ;;  %v1861_v15 = vmul.f32 1.442695, %v1860_v19 }
 0x44f   : > { %v1973_v22 = vmul.f32 1.442695, %v1972_v21 }
 0x450   : > { %v1233_v10 = vpop.permute.xlu1 %1232  ;;  %3228 = vpow2.f32 %v1861_v15 }
 0x451   : > { %v1239_v12 = vsel %vm1237_vm8, %v1233_v10, 0  ;;  %3230 = vpow2.f32 %v1973_v22 }
 0x452   : > { %2930 = vmatpush3.bf16.msra.mxu0 %v1239_v12 }
 0x453   : > { %2941 = vmatprep.subr.bf16.mxu0 %v3623_v3 }
 0x45a   : > { %v4406_v23 = vpop.eup %3228 }
 0x45b   : > { %v4410_v28 = vpop.eup %3230  ;;  %v1863_v29 = vsel %vm1171_vm3, %v4406_v23, 0.0 }
 0x45c   : > { %v1975_v30 = vsel %vm1171_vm3, %v4410_v28, 0.0 }
 0x46a   : > { %1564 = vadd.xlane.f32.xlu0 %v1563_v25 }
 0x46e   : > { %1752 = vadd.xlane.f32.xlu0 %v1751_v27 }
 0x472   : > { %1864 = vadd.xlane.f32.xlu1 %v1863_v29  ;;  %1976 = vadd.xlane.f32.xlu0 %v1975_v30 }
 0x479   : > { %v2083_v32 = vpop.xlane.xlu0 %2082 }
 0x47a   : > { %v2084_v33 = vsub.f32 %v4375_v55, %v2083_v32 }
 0x47c   : > { %v2085_v34 = vmul.f32 1.442695, %v2084_v33 }
 0x47e   : > { %3232 = vpow2.f32 %v2085_v34 }
 0x483   : > { %1869 = vrot.lane.b32.xlu1 %v4189_v16, %s3632_s8 }
 0x487   : > { %1981 = vrot.lane.b32.xlu1 %v4189_v16, %s3634_s5 }
 0x488   : > { %v4421_v35 = vpop.eup %3232 }
 0x489   : > { %v2087_v36 = vsel %vm1171_vm3, %v4421_v35, 0.0 }
 0x48a   : > { %2088 = vadd.xlane.f32.xlu0 %v2087_v36 }
 0x48b   : > { %2093 = vrot.lane.b32.xlu1 %v4189_v16, %s3635_s20 }
 0x4a0   : > { %1757 = vrot.lane.b32.xlu0 %v4189_v16, %s3633_s25  ;;  %s4677_s25 = sld [smem:[#allocation37_spill]] }
 0x4a6   : > { %s4678_s30 = scalar_lea.vmem %s4677_s25, %s4121_s26 }
 0x4ba   : > { %v1228_v37 = vpop.xlane.xlu1 %1227 }
 0x4bb   : > { %3234 = vrcp.f32 %v1228_v37 }
 0x4c2   : > { %v1341_v38 = vpop.xlane.xlu0 %1340 }
 0x4c3   : > { %3236 = vrcp.f32 %v1341_v38 }
 0x4c5   : > { %v3235_v39 = vpop.eup %3234 }
 0x4c6   : > { %v1230_v40 = vmul.f32 %v3235_v39, %v4381_v0  ;;  %v1458_v45 = vpop.permute.xlu0 %1457 }
 0x4c7   : > { %v1463_v47 = vsel %vm1237_vm8, %v1458_v45, 0 }
 0x4c8   : > { %v1231_v41 = vpack.c.bf16 %v1230_v40, %v1230_v40  ;;  %v3210_v40 = vld [vmem:[%s4671_s17] sm:$0xff]  }
 0x4c9   : > { %3020 = vmatpush3.bf16.msra.mxu1 %v3210_v40 }
 0x4ca   : > { %2932 = vmatmul.mubr.msk.bf16.vlgmr.msra.gmra.mrb[4].mxu0 %vm1171_vm3, %v1231_v41  ;;  %v1453_v43 = vpop.xlane.xlu1 %1452  ;;  %3021 = vmatprep.subr.bf16.mxu1 %v3623_v3 }
 0x4cb   : > { %2942 = vmatpush3.bf16.msra.mxu0 %v1351_v42  ;;  %3238 = vrcp.f32 %v1453_v43  ;;  %2943 = vmatprep.mubr.msk.bf16.mxu0 %vm3624_vm1, %v3623_v3 }
 0x4cc   : > { %2953 = vmatprep.subr.bf16.mxu0 %v3623_v3 }
 0x4cd   : > { %v3237_v16 = vpop.eup %3236 }
 0x4ce   : > { %v1343_v44 = vmul.f32 %v3237_v16, %v4386_v6  ;;  %v1570_v50 = vpop.permute.xlu1 %1569 }
 0x4cf   : > { %v1575_v53 = vsel %vm1237_vm8, %v1570_v50, 0 }
 0x4d0   : > { %v1344_v46 = vpack.c.bf16 %v1343_v44, %v1343_v44  ;;  %v3211_v44 = vld [vmem:[%s4672_s29 + $0x8] sm:$0xff]  }
 0x4d1   : > { %3022 = vmatpush3.bf16.msra.mxu1 %v3211_v44 }
 0x4d2   : > { %2944 = vmatmul.mubr.msk.bf16.vlgmr.msra.gmra.mrb[8].mxu0 %vm1171_vm3, %v1344_v46  ;;  %3035 = vmatprep.subr.bf16.mxu1 %v3623_v3 }
 0x4d3   : > { %2954 = vmatpush3.bf16.msra.mxu0 %v1463_v47  ;;  %2955 = vmatprep.mubr.msk.bf16.mxu0 %vm3624_vm1, %v3623_v3 }
 0x4d4   : > { %2965 = vmatprep.subr.bf16.mxu0 %v3623_v3 }
 0x4d5   : > { %v3239_v48 = vpop.eup %3238 }
 0x4d6   : > { %v1455_v49 = vmul.f32 %v3239_v48, %v4390_v62 }
 0x4d8   : > { %v1456_v52 = vpack.c.bf16 %v1455_v49, %v1455_v49 }
 0x4da   : > { %2956 = vmatmul.mubr.msk.bf16.vlgmr.msra.gmra.mrb[12].mxu0 %vm1171_vm3, %v1456_v52 }
 0x4db   : > { %2966 = vmatpush3.bf16.msra.mxu0 %v1575_v53  ;;  %2967 = vmatprep.mubr.msk.bf16.mxu0 %vm3624_vm1, %v3623_v3 }
 0x4dc   : > { %2977 = vmatprep.subr.bf16.mxu0 %v3623_v3 }
 0x4f7   : > { %v1565_v54 = vpop.xlane.xlu0 %1564 }
 0x4f8   : > { %3240 = vrcp.f32 %v1565_v54 }
 0x4fb   : > { %v1753_v58 = vpop.xlane.xlu0 %1752 }
 0x4fc   : > { %3242 = vrcp.f32 %v1753_v58 }
 0x4ff   : > { %v1865_v59 = vpop.xlane.xlu1 %1864  ;;  %v1977_v60 = vpop.xlane.xlu0 %1976 }
 0x500   : > { %3244 = vrcp.f32 %v1865_v59 }
 0x501   : > { %3246 = vrcp.f32 %v1977_v60 }
 0x502   : > { %v3241_v55 = vpop.eup %3240 }
 0x503   : > { %v1567_v56 = vmul.f32 %v3241_v55, %v3225_v24  ;;  %v1870_v4 = vpop.permute.xlu1 %1869 }
 0x504   : > { %v1875_v51 = vsel %vm1237_vm8, %v1870_v4, 0 }
 0x505   : > { %v1568_v57 = vpack.c.bf16 %v1567_v56, %v1567_v56 }
 0x506   : > { %v3243_v61 = vpop.eup %3242 }
 0x507   : > { %2968 = vmatmul.mubr.msk.bf16.vlgmr.msra.gmra.mrb[16].mxu0 %vm1171_vm3, %v1568_v57  ;;  %v1755_v0 = vmul.f32 %v3243_v61, %v4404_v26  ;;  %v1982_v7 = vpop.permute.xlu1 %1981 }
 0x508   : > { %2979 = vmatprep.mubr.msk.bf16.mxu0 %vm3624_vm1, %v3623_v3  ;;  %v1987_v10 = vsel %vm1237_vm8, %v1982_v7, 0 }
 0x509   : > { %v1756_v5 = vpack.c.bf16 %v1755_v0, %v1755_v0 }
 0x50a   : > { %v3245_v6 = vpop.eup %3244 }
 0x50b   : > { %v1867_v62 = vmul.f32 %v3245_v6, %v4406_v23  ;;  %v3247_v9 = vpop.eup %3246  ;;  %v2094_v12 = vpop.permute.xlu1 %2093 }
 0x50c   : > { %v1979_v11 = vmul.f32 %v3247_v9, %v4410_v28  ;;  %v2099_v17 = vsel %vm1237_vm8, %v2094_v12, 0 }
 0x50d   : > { %v1868_v8 = vpack.c.bf16 %v1867_v62, %v1867_v62 }
 0x50e   : > { %v1980_v13 = vpack.c.bf16 %v1979_v11, %v1979_v11 }
 0x517   : > { %v2089_v63 = vpop.xlane.xlu0 %2088 }
 0x518   : > { %3248 = vrcp.f32 %v2089_v63 }
 0x51b   : > { %v1758_v1 = vpop.permute.xlu0 %1757 }
 0x51c   : > { %v1763_v2 = vsel %vm1237_vm8, %v1758_v1, 0 }
 0x51d   : > { %2978 = vmatpush3.bf16.msra.mxu0 %v1763_v2 }
 0x51e   : > { %2989 = vmatprep.subr.bf16.mxu0 %v3623_v3 }
 0x520   : > { %2980 = vmatmul.mubr.msk.bf16.vlgmr.msra.gmra.mrb[20].mxu0 %vm1171_vm3, %v1756_v5 }
 0x521   : > { %2990 = vmatpush3.bf16.msra.mxu0 %v1875_v51  ;;  %2991 = vmatprep.mubr.msk.bf16.mxu0 %vm3624_vm1, %v3623_v3 }
 0x522   : > { %3001 = vmatprep.subr.bf16.mxu0 %v3623_v3  ;;  %v3249_v14 = vpop.eup %3248 }
 0x523   : > { %v2091_v18 = vmul.f32 %v3249_v14, %v4421_v35 }
 0x525   : > { %v2092_v19 = vpack.c.bf16 %v2091_v18, %v2091_v18 }
 0x528   : > { %2992 = vmatmul.mubr.msk.bf16.vlgmr.msra.gmra.mrb[24].mxu0 %vm1171_vm3, %v1868_v8  ;;  %v2844_v8 = vld [vmem:[%s4674_s1] ss:$0 sm:$0xff] }
 0x529   : > { %3002 = vmatpush3.bf16.msra.mxu0 %v1987_v10  ;;  %3003 = vmatprep.mubr.msk.bf16.mxu0 %vm3624_vm1, %v3623_v3 }
 0x52a   : > { %3013 = vmatprep.subr.bf16.mxu0 %v3623_v3 }
 0x530   : > { %3004 = vmatmul.mubr.msk.bf16.vlgmr.msra.gmra.mrb[28].mxu0 %vm1171_vm3, %v1980_v13 }
 0x531   : > { %3014 = vmatpush3.bf16.msra.mxu0 %v2099_v17  ;;  %3015 = vmatprep.mubr.msk.bf16.mxu0 %vm3624_vm1, %v3623_v3  ;;  %v3262_v17 = vld [vmem:[#allocation2] sm:$0xff] }
 0x532   : > { %3027 = vmatprep.subr.bf16.mxu0 %v3623_v3 }
 0x538   : > { %3016 = vmatmul.mubr.msk.bf16.vlgmr.msra.gmra.mrb[32].mxu0 %vm1171_vm3, %v2092_v19 }
 0x539   : > { %3031 = vmatprep.mubr.msk.bf16.mxu0 %vm3624_vm1, %v3623_v3 }
 0x59d   : > { %v1275_v20 = vpop.f32.mrb[4].mxu0 }
 0x59e   : > { %v2933_v21 = vpop.f32.mrb[5].mxu0 }
 0x59f   : > { %v1278_v15 = vpop.f32.mrb[6].mxu0 }
 0x5a0   : > { %v2934_v22 = vpop.f32.mrb[7].mxu0 }
 0x5a5   : > { %v1387_v24 = vpop.f32.mrb[8].mxu0 }
 0x5a6   : > { %v2945_v25 = vpop.f32.mrb[9].mxu0 }
 0x5a7   : > { %v1390_v26 = vpop.f32.mrb[10].mxu0 }
 0x5a8   : > { %v2946_v23 = vpop.f32.mrb[11].mxu0 }
 0x5ad   : > { %v1499_v27 = vpop.f32.mrb[12].mxu0 }
 0x5ae   : > { %v2957_v28 = vpop.f32.mrb[13].mxu0 }
 0x5af   : > { %v1502_v29 = vpop.f32.mrb[14].mxu0 }
 0x5b0   : > { %v2958_v30 = vpop.f32.mrb[15].mxu0 }
 0x5da   : > { %v1611_v31 = vpop.f32.mrb[16].mxu0 }
 0x5db   : > { %v2969_v32 = vpop.f32.mrb[17].mxu0 }
 0x5dc   : > { %v1614_v33 = vpop.f32.mrb[18].mxu0  ;;  %v3212_v32 = vld [vmem:[%s4675_s27] sm:$0xff]  }
 0x5dd   : > { %v2970_v34 = vpop.f32.mrb[19].mxu0  ;;  %3028 = vmatpush3.bf16.msra.mxu0 %v3212_v32  ;;  %v3213_v33 = vld [vmem:[%s4676_s16 + $0x8] sm:$0xff]  }
 0x5de   : > { %3029 = vmatprep.subr.bf16.mxu0 %v3623_v3 }
 0x5e1   : > { %3030 = vmatpush3.bf16.msra.mxu0 %v3213_v33 }
 0x5f3   : > { %v1799_v35 = vpop.f32.mrb[20].mxu0 }
 0x5f4   : > { %v2981_v36 = vpop.f32.mrb[21].mxu0 }
 0x5f5   : > { %v1802_v37 = vpop.f32.mrb[22].mxu0 }
 0x5f6   : > { %v2982_v38 = vpop.f32.mrb[23].mxu0 }
 0x5fb   : > { %v1911_v39 = vpop.f32.mrb[24].mxu0 }
 0x5fc   : > { %v3193_v41 = vpack.i.bf16 %v1911_v39, %v1387_v24  ;;  %v2993_v42 = vpop.f32.mrb[25].mxu0 }
 0x5fd   : > { %v1914_v43 = vpop.f32.mrb[26].mxu0 }
 0x5fe   : > { %3194 = vrot.lane.b32.xlu1 %v3193_v41, %s3636_s2  ;;  %v2994_v16 = vpop.f32.mrb[27].mxu0  ;;  %v2848_v41 = vld [vmem:[%s4678_s30] ss:$0 sm:$0xff] }
 0x603   : > { %v2023_v45 = vpop.f32.mrb[28].mxu0 }
 0x604   : > { %v3198_v46 = vpack.i.bf16 %v2023_v45, %v1499_v27  ;;  %v3005_v47 = vpop.f32.mrb[29].mxu0  ;;  %v2849_v45 = vld [vmem:[%s962_s7] ss:$0 sm:$0xff]  ;;  %s4680_s7 = scalar_lea.vmem [#allocation15], %s4105_s14 }
 0x605   : > { %v2026_v48 = vpop.f32.mrb[30].mxu0 }
 0x606   : > { %3199 = vrot.lane.b32.xlu1 %v3198_v46, %s3637_s10  ;;  %v3006_v49 = vpop.f32.mrb[31].mxu0 }
 0x60b   : > { %v2135_v50 = vpop.f32.mrb[32].mxu0 }
 0x60c   : > { %v3203_v52 = vpack.i.bf16 %v2135_v50, %v1611_v31  ;;  %v3017_v53 = vpop.f32.mrb[33].mxu0  ;;  %v3214_v50 = vld [vmem:[%s4147_s23] sm:$0xff]  }
 0x60d   : > { %v2138_v54 = vpop.f32.mrb[34].mxu0  ;;  %v3216_v53 = vld [vmem:[%s4147_s23 + $0x10] sm:$0xff]  }
 0x60e   : > { %3204 = vrot.lane.b32.xlu0 %v3203_v52, %s3638_s22  ;;  %v3018_v55 = vpop.f32.mrb[35].mxu0  ;;  %v3215_v52 = vld [vmem:[%s4147_s23 + $0x8] sm:$0xff]   ;;  %v3217_v54 = vld [vmem:[%s4147_s23 + $0x18] sm:$0xff]   ;;  %s4681_s23 = scalar_lea.vmem [#allocation16], %s4105_s14 }
 0x60f   : > { %v2850_v55 = vld [vmem:[%s4680_s7] ss:$0 sm:$0xff] }
 0x670   : > { %v3195_v56 = vpop.permute.xlu1 %3194 }
 0x671   : > { %v3197_v58 = vunpack.i.h.bf16 %v3195_v56  ;;  %v3196_v59 = vunpack.i.l.bf16 %v3195_v56 }
 0x673   : > { %v2153_v0 = vsel %vm1171_vm3, %v1799_v35, %v3197_v58  ;;  %v1629_v1 = vsel %vm1171_vm3, %v1275_v20, %v3196_v59  ;;  %v3263_v20 = vld [vmem:[#allocation2 + $0x8] sm:$0xff] }
 0x678   : > { %v3200_v57 = vpop.permute.xlu1 %3199 }
 0x679   : > { %v3202_v60 = vunpack.i.h.bf16 %v3200_v57  ;;  %v3201_v61 = vunpack.i.l.bf16 %v3200_v57 }
 0x67b   : > { %v2154_v5 = vsel %vm1630_vm9, %v2153_v0, %v3202_v60  ;;  %v1631_v6 = vsel %vm1630_vm9, %v1629_v1, %v3201_v61 }
 0x680   : > { %v3205_v63 = vpop.permute.xlu0 %3204 }
 0x681   : > { %v3207_v2 = vunpack.i.h.bf16 %v3205_v63  ;;  %v3206_v4 = vunpack.i.l.bf16 %v3205_v63 }
 0x683   : > { %v2155_v51 = vsel %vm1632_vm10, %v2154_v5, %v3207_v2  ;;  %v1633_v62 = vsel %vm1632_vm10, %v1631_v6, %v3206_v4 }
 0x684   : > { %v2156_v7 = vpack.c.bf16 %v2155_v51, %v1633_v62 }
 0x686   : > { %3024 = vmatmul.mubr.msk.bf16.vlgmr.msra.gmra.mrb[32].mxu1 %vm1020_vm2, %v2156_v7 }
 0x687   : > { %3043 = vmatprep.mubr.msk.bf16.mxu1 %vm3624_vm1, %v3623_v3  ;;  %3036 = vmatpush3.bf16.msra.mxu1 %v3214_v50  ;;  %vm2389_vm1 = vcmask 523264  }
 0x688   : > { %3037 = vmatprep.subr.bf16.mxu1 %v3623_v3 }
 0x68b   : > { %3038 = vmatpush3.bf16.msra.mxu1 %v3215_v52 }
 0x68c   : > { %3039 = vmatprep.subr.bf16.mxu1 %v3623_v3 }
 0x68f   : > { %3040 = vmatpush3.bf16.msra.mxu1 %v3216_v53 }
 0x690   : > { %3041 = vmatprep.subr.bf16.mxu1 %v3623_v3 }
 0x693   : > { %3042 = vmatpush3.bf16.msra.mxu1 %v3217_v54 }
 0x759   : > { %v2217_v9 = vpop.f32.mrb[32].mxu1 }
 0x75a   : > { %v2218_v10 = vadd.f32 %v2844_v8, %v2217_v9  ;;  %v3025_v11 = vpop.f32.mrb[33].mxu1 }
 0x75b   : > { %v2220_v12 = vpop.f32.mrb[34].mxu1 }
 0x75c   : > { %v2221_v13 = vadd.f32 %v2844_v8, %v2220_v12  ;;  %v3026_v14 = vpop.f32.mrb[35].mxu1  ;;  %v2224_v18 = vadd.f32 %v3262_v17, %v2218_v10  ;;  %v2854_v8 = vld [vmem:[%s4681_s23] ss:$0 sm:$0xff] }
 0x75e   : > { %v2228_v19 = vsel %vm1020_vm2, %v2224_v18, 0.0  ;;  %v2225_v21 = vadd.f32 %v3263_v20, %v2221_v13 }
 0x75f   : > { %2229 = vadd.xlane.f32.xlu1 %v2228_v19 }
 0x760   : > { %v2231_v15 = vsel %vm1020_vm2, %v2225_v21, 0.0 }
 0x761   : > { %2232 = vadd.xlane.f32.xlu0 %v2231_v15 }
 0x7ec   : > { %v2230_v22 = vpop.xlane.xlu1 %2229 }
 0x7ed   : > { %v2235_v24 = vmul.f32 0.03125, %v2230_v22 }
 0x7ee   : > { %v2233_v25 = vpop.xlane.xlu0 %2232 }
 0x7ef   : > { %v2237_v26 = vsub.f32 %v2224_v18, %v2235_v24  ;;  %v2236_v23 = vmul.f32 0.03125, %v2233_v25 }
 0x7f1   : > { %v2238_v27 = vsub.f32 %v2225_v21, %v2236_v23  ;;  %v2239_v28 = vmul.f32 %v2237_v26, %v2237_v26 }
 0x7f3   : > { %v2241_v29 = vsel %vm1020_vm2, %v2239_v28, 0.0  ;;  %v2240_v30 = vmul.f32 %v2238_v27, %v2238_v27 }
 0x7f4   : > { %2242 = vadd.xlane.f32.xlu0 %v2241_v29 }
 0x7f5   : > { %v2244_v31 = vsel %vm1020_vm2, %v2240_v30, 0.0 }
 0x7f6   : > { %2245 = vadd.xlane.f32.xlu1 %v2244_v31 }
 0x881   : > { %v2243_v34 = vpop.xlane.xlu0 %2242 }
 0x882   : > { %v2247_v35 = vmul.f32 0.03125, %v2243_v34 }
 0x883   : > { %v2246_v36 = vpop.xlane.xlu1 %2245 }
 0x884   : > { %v2249_v37 = vadd.f32 1e-12, %v2247_v35  ;;  %v2248_v38 = vmul.f32 0.03125, %v2246_v36 }
 0x886   : > { %3250 = vrsqrt.f32 %v2249_v37  ;;  %v2250_v39 = vadd.f32 1e-12, %v2248_v38  ;;  %v2860_v37 = vld [vmem:[%s970_s3] ss:$0 sm:$0xff] }
 0x888   : > { %3252 = vrsqrt.f32 %v2250_v39 }
 0x890   : > { %v3251_v40 = vpop.eup %3250 }
 0x891   : > { %v2253_v42 = vmul.f32 %v3251_v40, %v2237_v26  ;;  %v2861_v40 = vld [vmem:[%s973_s18] ss:$0 sm:$0xff] }
 0x892   : > { %v3253_v43 = vpop.eup %3252 }
 0x893   : > { %v2261_v16 = vmul.f32 %v2848_v41, %v2253_v42  ;;  %v2254_v44 = vmul.f32 %v3253_v43, %v2238_v27 }
 0x895   : > { %v2262_v46 = vmul.f32 %v2848_v41, %v2254_v44  ;;  %v2269_v47 = vadd.f32 %v2849_v45, %v2261_v16 }
 0x897   : > { %v2270_v48 = vadd.f32 %v2849_v45, %v2262_v46 }
 0x899   : > { %v2271_v49 = vpack.c.bf16 %v2270_v48, %v2269_v47 }
 0x89b   : > { %3032 = vmatmul.mubr.msk.bf16.vlgmr.msra.gmra.mrb[36].mxu0 %vm1020_vm2, %v2271_v49 }
 0x96e   : > { %v2332_v56 = vpop.f32.mrb[36].mxu0 }
 0x96f   : > { %v2333_v57 = vadd.f32 %v2850_v55, %v2332_v56  ;;  %v3033_v58 = vpop.f32.mrb[37].mxu0 }
 0x970   : > { %v2335_v59 = vpop.f32.mrb[38].mxu0 }
 0x971   : > { %v2341_v60 = vmul.f32 0.70710677, %v2333_v57  ;;  %v2336_v61 = vadd.f32 %v2850_v55, %v2335_v59  ;;  %v3034_v63 = vpop.f32.mrb[39].mxu0  ;;  %v2339_v5 = vmul.f32 0.5, %v2333_v57 }
 0x973   : > { %3254 = verf.f32 %v2341_v60  ;;  %v2342_v0 = vmul.f32 0.70710677, %v2336_v61  ;;  %v2340_v3 = vmul.f32 0.5, %v2336_v61 }
 0x975   : > { %3256 = verf.f32 %v2342_v0 }
 0x97d   : > { %v3255_v1 = vpop.eup %3254 }
 0x97e   : > { %v2345_v2 = vadd.f32 1.0, %v3255_v1 }
 0x97f   : > { %v3257_v4 = vpop.eup %3256 }
 0x980   : > { %v2346_v6 = vadd.f32 1.0, %v3257_v4  ;;  %v2347_v51 = vmul.f32 %v2345_v2, %v2339_v5 }
 0x982   : > { %v2348_v62 = vmul.f32 %v2346_v6, %v2340_v3 }
 0x984   : > { %v2349_v7 = vpack.c.bf16 %v2348_v62, %v2347_v51 }
 0x986   : > { %3044 = vmatmul.mubr.msk.bf16.vlgmr.msra.gmra.mrb[36].mxu1 %vm2389_vm1, %v2349_v7 }
 0xa59   : > { %v2427_v9 = vpop.f32.mrb[36].mxu1 }
 0xa5a   : > { %v2428_v10 = vadd.f32 %v2854_v8, %v2427_v9  ;;  %v3045_v11 = vpop.f32.mrb[37].mxu1 }
 0xa5b   : > { %v2430_v12 = vpop.f32.mrb[38].mxu1 }
 0xa5c   : > { %v2431_v13 = vadd.f32 %v2854_v8, %v2430_v12  ;;  %v3046_v14 = vpop.f32.mrb[39].mxu1  ;;  %v2434_v17 = vadd.f32 %v2428_v10, %v2269_v47 }
 0xa5e   : > { %v2438_v18 = vsel %vm1020_vm2, %v2434_v17, 0.0  ;;  %v2435_v19 = vadd.f32 %v2431_v13, %v2270_v48 }
 0xa5f   : > { %2439 = vadd.xlane.f32.xlu0 %v2438_v18 }
 0xa60   : > { %v2441_v20 = vsel %vm1020_vm2, %v2435_v19, 0.0 }
 0xa61   : > { %2442 = vadd.xlane.f32.xlu1 %v2441_v20 }
 0xaec   : > { %v2440_v21 = vpop.xlane.xlu0 %2439 }
 0xaed   : > { %v2444_v15 = vmul.f32 0.03125, %v2440_v21 }
 0xaee   : > { %v2443_v22 = vpop.xlane.xlu1 %2442 }
 0xaef   : > { %v2446_v24 = vsub.f32 %v2434_v17, %v2444_v15  ;;  %v2445_v25 = vmul.f32 0.03125, %v2443_v22 }
 0xaf1   : > { %v2447_v26 = vsub.f32 %v2435_v19, %v2445_v25  ;;  %v2448_v23 = vmul.f32 %v2446_v24, %v2446_v24 }
 0xaf3   : > { %v2450_v27 = vsel %vm1020_vm2, %v2448_v23, 0.0  ;;  %v2449_v28 = vmul.f32 %v2447_v26, %v2447_v26 }
 0xaf4   : > { %2451 = vadd.xlane.f32.xlu0 %v2450_v27 }
 0xaf5   : > { %v2453_v29 = vsel %vm1020_vm2, %v2449_v28, 0.0 }
 0xaf6   : > { %2454 = vadd.xlane.f32.xlu1 %v2453_v29 }
 0xb81   : > { %v2452_v30 = vpop.xlane.xlu0 %2451 }
 0xb82   : > { %v2456_v31 = vmul.f32 0.03125, %v2452_v30 }
 0xb83   : > { %v2455_v32 = vpop.xlane.xlu1 %2454 }
 0xb84   : > { %v2458_v33 = vadd.f32 1e-12, %v2456_v31  ;;  %v2457_v34 = vmul.f32 0.03125, %v2455_v32 }
 0xb86   : > { %3258 = vrsqrt.f32 %v2458_v33  ;;  %v2459_v35 = vadd.f32 1e-12, %v2457_v34 }
 0xb88   : > { %3260 = vrsqrt.f32 %v2459_v35 }
 0xb90   : > { %v3259_v36 = vpop.eup %3258 }
 0xb91   : > { %v2462_v38 = vmul.f32 %v3259_v36, %v2446_v24 }
 0xb92   : > { %v3261_v39 = vpop.eup %3260 }
 0xb93   : > { %v2470_v41 = vmul.f32 %v2860_v37, %v2462_v38  ;;  %v2463_v42 = vmul.f32 %v3261_v39, %v2447_v26 }
 0xb95   : > { %v2478_v43 = vadd.f32 %v2861_v40, %v2470_v41  ;;  %v2471_v16 = vmul.f32 %v2860_v37, %v2463_v42 }
 0xb97   : > { %2480 = vst.msk [vmem:[#allocation2] sm:$0xff] %vm1020_vm2, %v2478_v43  ;;  %2482 = vst.msk [vmem:[%s4157_s24] sm:$0xff] %vm1020_vm2, %v2478_v43  ;;  %v2479_v44 = vadd.f32 %v2861_v40, %v2471_v16 }
 0xb99   : > { %2481 = vst.msk [vmem:[#allocation2 + $0x8] sm:$0xff] %vm1020_vm2, %v2479_v44  ;;  %2483 = vst.msk [vmem:[%s4157_s24 + $0x8] sm:$0xff] %vm1020_vm2, %v2479_v44 }
 0xb9a PF: > { %s32_s19 = sadd.s32 1, %s3607_s19   ;;  %s4684_s3 = sld [smem:[#allocation22_spill]] }
 0xb9b   : > { %p29_p3 = scmp.ge.s32.totalorder %s32_s19, 4   ;;  %s4685_s29 = sld [smem:[#allocation26_spill]] }
 0xb9c   : > { %s4686_s26 = sld [smem:[#allocation25_spill]]  ;;  %s4687_s27 = smov %s3591_s28 }
 0xb9d   : > { %s4689_s30 = smov %s3603_s0  ;;  %31 = sbr.rel (!%p29_p3) target bundleno = 23 (0x17), region = 232 }
 0xba0   : > { %s4688_s28 = smov %s4684_s3 }
 0xba2   : > { %s4690_s0 = smov %s4686_s26 }
 0xba4   :  { %2514 = vsyncpa [#allocation4], 1 }
 0xba5   :  { %2516 = vsyncpa [#allocation4 + $0x1], 1 }
 0xba6   :  { %2517 = vsyncpa [#allocation8], 1 }
 0xba7   :  { %2518 = vsyncpa [#allocation11], 1 }
 0xba8   :  { %2519 = vsyncpa [#allocation5], 1 }
 0xba9   :  { %2521 = vsyncpa [#allocation5 + $0x1], 1 }

</bundles_post_ra>
